<compile_context>
chip_gen: v7x
topology: tpu7x:2x2x1
jax: 0.10.0
libtpu: 0.0.40
codegen_flags: <defaults>
</compile_context>

<pallas_src>
import functools

import jax
import jax.numpy as jnp
from jax.experimental import pallas as pl
from jax.experimental.pallas import tpu as pltpu


def qst_encoder_kernel(tok_ref, embg_ref, wbig_ref, bias_ref, fcw_ref, fcb_ref,
                       out_ref, gates_buf, *,
                       num_layers, hidden_size, seq_len, batch_pad):
    """Fused QstEncoder forward (wavefront-stacked LSTM).

    tok_ref  : (T*Bp, 1)         int32  time-major, batch-padded token ids
    embg_ref : (V, 4H)           f32    tanh(embedding) @ W_ih[0]^T, gate-scaled
    wbig_ref : (L*H, L*4H)       bf16   block matrix: rows l*H.. hold W_hh[l]^T
                                        (cols l*4H..) and W_ih[l+1]^T (cols (l+1)*4H..)
    bias_ref : (1, L*4H)         f32    b_ih + b_hh for all layers, gate-scaled
    fcw_ref  : (2*L*H, Fp)       f32    fc weight, rows in [h_0,c_0,h_1,c_1,...] order
    fcb_ref  : (1, Fp)           f32
    out_ref  : (Bp, Fp)          f32
    gates_buf: VMEM scratch ((T+L-1)*Bp, L*4H) f32  per-wave pre-activation adds
    """
    H = hidden_size
    L = num_layers
    T = seq_len
    Bp = batch_pad
    V = embg_ref.shape[0]
    G = 4 * H
    n_waves = T + L - 1

    # ---- prologue: layer-0 input gates for all timesteps, plus biases -------
    # one-hot x (V, 4H) table == embedding lookup fused with tanh and W_ih[0]
    # (exact, because the one-hot matmul selects single table rows).
    ids = tok_ref[...]                                            # (T*Bp, 1)
    vocab_iota = jax.lax.broadcasted_iota(jnp.int32, (T * Bp, V), 1)
    onehot = (ids == vocab_iota).astype(jnp.float32)              # (T*Bp, V)
    bias_all = bias_ref[...]                                      # (1, L*4H)
    # Fill every wave slot with the (gate-scaled) biases of all layers, then
    # overwrite layer-0's block for the real timesteps with x-gates + bias.
    gates_buf[...] = jnp.broadcast_to(bias_all, (n_waves * Bp, L * G))
    gates_buf[0:T * Bp, 0:G] = (
        jnp.dot(onehot, embg_ref[...], preferred_element_type=jnp.float32)
        + bias_all[:, 0:G])

    # ---- wavefront recurrence ------------------------------------------------
    # At wave s, layer l processes timestep (s - l).  Its operands (h of layer
    # l-1 at the same timestep and its own h/c of the previous timestep) were
    # all produced in wave s-1, so one fused (Bp, L*H) x (L*H, L*4H) bf16 MXU
    # push covers every layer's recurrent + input-to-hidden GEMM, and one
    # full-width tanh covers every layer's gate activations.
    h = [jnp.zeros((Bp, H), jnp.float32) for _ in range(L)]
    c = [jnp.zeros((Bp, H), jnp.float32) for _ in range(L)]

    # TODO(synk): for long sequences switch this unrolled Python loop to a
    # lax.fori_loop(..., unroll=2) with the per-layer state kept in VMEM.
    for s in range(n_waves):
        h_cat = jnp.concatenate(h, axis=1)                        # (Bp, L*H)
        raw = jnp.dot(h_cat.astype(jnp.bfloat16), wbig_ref[...],
                      preferred_element_type=jnp.float32)         # (Bp, L*4H)
        pre = raw + gates_buf[s * Bp:(s + 1) * Bp, :]
        # Single full-width EUP pass: i/f/o columns were pre-scaled by 0.5, so
        # sigmoid(z) = 0.5*(tanh(0.5 z) + 1) needs no second tanh pass.
        t_all = jnp.tanh(pre)                                     # (Bp, L*4H)
        for l in range(L):
            t_step = s - l
            if t_step < 0 or t_step >= T:
                continue                                          # layer idle this wave
            blk = t_all[:, l * G:(l + 1) * G]
            i_g = 0.5 * (blk[:, 0 * H:1 * H] + 1.0)
            f_g = 0.5 * (blk[:, 1 * H:2 * H] + 1.0)
            g_g = blk[:, 2 * H:3 * H]
            o_g = 0.5 * (blk[:, 3 * H:4 * H] + 1.0)
            c[l] = f_g * c[l] + i_g * g_g
            h[l] = o_g * jnp.tanh(c[l])

    # ---- epilogue: [h_l, c_l] concat -> tanh -> fc ---------------------------
    feat = jnp.concatenate([x for l in range(L) for x in (h[l], c[l])], axis=1)
    feat = jnp.tanh(feat)                                         # (Bp, 2*L*H)
    out_ref[...] = (jnp.dot(feat, fcw_ref[...],
                            preferred_element_type=jnp.float32)
                    + fcb_ref[...])


def qst_encoder_forward(tokens, embedding, w_ih, w_hh, b_ih, b_hh, fc_w, fc_b,
                        *, num_layers, hidden_size, feature_size):
    """tokens: (B, T) int32.  Returns (B, feature_size) float32."""
    B, T = tokens.shape
    V, E = embedding.shape
    H = hidden_size
    L = num_layers
    assert E == H, "stacked per-layer weights require embed_size == hidden_size"

    Bp = ((max(B, 1) + 7) // 8) * 8            # sublane-aligned batch
    Fp = ((feature_size + 127) // 128) * 128   # lane-dense output width

    # Tokens: pad batch, go time-major, flatten so rows of timestep t are
    # contiguous: row index = t * Bp + b.
    tok = jnp.pad(tokens.astype(jnp.int32), ((0, Bp - B), (0, 0)))   # (Bp, T)
    tok = jnp.transpose(tok, (1, 0)).reshape(T * Bp, 1)              # (T*Bp,1)

    # Gate trick: sigmoid(z) = 0.5*(tanh(0.5 z)+1).  Pre-scale the i/f/o gate
    # columns of W_ih, W_hh and the bias by 0.5 so the kernel needs only a
    # single full-width tanh per wave (PyTorch gate order: [i, f, g, o]).
    col_scale = jnp.concatenate(
        [jnp.full((2 * H,), 0.5, jnp.float32),      # i, f
         jnp.ones((H,), jnp.float32),               # g
         jnp.full((H,), 0.5, jnp.float32)])         # o

    wih_t = jnp.transpose(w_ih, (0, 2, 1)).astype(jnp.float32) * col_scale  # (L,E,4H)
    whh_t = jnp.transpose(w_hh, (0, 2, 1)).astype(jnp.float32) * col_scale  # (L,H,4H)
    bias = ((b_ih + b_hh).reshape(L, 4 * H).astype(jnp.float32)
            * col_scale).reshape(1, L * 4 * H)                              # (1,L*4H)

    # Embedding lookup fused with tanh and layer-0's input-to-hidden weights.
    embg = jnp.tanh(embedding.astype(jnp.float32)) @ wih_t[0]               # (V, 4H)

    # Block recurrent weight for the wavefront: layer l's rows feed its own
    # W_hh block and layer (l+1)'s W_ih block.  bf16 operands -> one MXU push
    # per wave, f32 accumulation inside the kernel.
    wbig = jnp.zeros((L * H, L * 4 * H), jnp.float32)
    for l in range(L):
        wbig = wbig.at[l * H:(l + 1) * H, l * 4 * H:(l + 1) * 4 * H].set(whh_t[l])
        if l + 1 < L:
            wbig = wbig.at[l * H:(l + 1) * H,
                           (l + 1) * 4 * H:(l + 2) * 4 * H].set(wih_t[l + 1])
    wbig = wbig.astype(jnp.bfloat16)

    # fc: (F, 2LH) -> (2LH, Fp) with zero-padded lanes; row blocks already match
    # the torch.cat((hidden, cell), 2) -> [h_0, c_0, h_1, c_1, ...] layout.
    fcw_t = jnp.transpose(fc_w, (1, 0)).astype(jnp.float32)
    fcw_t = jnp.pad(fcw_t, ((0, 0), (0, Fp - feature_size)))
    fcb = jnp.pad(fc_b.reshape(1, feature_size).astype(jnp.float32),
                  ((0, 0), (0, Fp - feature_size)))                  # (1, Fp)

    kernel = functools.partial(qst_encoder_kernel,
                               num_layers=L, hidden_size=H,
                               seq_len=T, batch_pad=Bp)

    vmem = pl.BlockSpec(memory_space=pltpu.MemorySpace.VMEM)
    out = pl.pallas_call(
        kernel,
        out_shape=jax.ShapeDtypeStruct((Bp, Fp), jnp.float32),
        in_specs=[vmem] * 6,
        out_specs=vmem,
        scratch_shapes=[pltpu.VMEM(((T + L - 1) * Bp, L * 4 * H), jnp.float32)],
    )(tok, embg, wbig, bias, fcw_t, fcb)
    # TODO(synk): once Bp >= 16, add a batch grid axis with
    # dimension_semantics=("parallel",) so v7x's second TensorCore is used and
    # VMEM residency stays under its 64 MiB.
    return out[:B, :feature_size]


def _reference(tokens, embedding, w_ih, w_hh, b_ih, b_hh, fc_w, fc_b,
               num_layers, hidden_size):
    """Pure-JAX reference mirroring the PyTorch QstEncoder forward."""
    B, T = tokens.shape
    H = hidden_size
    x = jnp.tanh(embedding[tokens])              # (B, T, E)
    x = jnp.transpose(x, (1, 0, 2))              # (T, B, E)
    layer_in = x
    h_all, c_all = [], []
    for l in range(num_layers):
        h = jnp.zeros((B, H), jnp.float32)
        c = jnp.zeros((B, H), jnp.float32)
        outs = []
        for t in range(T):
            gates = (layer_in[t] @ w_ih[l].T + h @ w_hh[l].T
                     + b_ih[l] + b_hh[l])
            i = jax.nn.sigmoid(gates[:, 0 * H:1 * H])
            f = jax.nn.sigmoid(gates[:, 1 * H:2 * H])
            g = jnp.tanh(gates[:, 2 * H:3 * H])
            o = jax.nn.sigmoid(gates[:, 3 * H:4 * H])
            c = f * c + i * g
            h = o * jnp.tanh(c)
            outs.append(h)
        layer_in = jnp.stack(outs, axis=0)
        h_all.append(h)
        c_all.append(c)
    feat = jnp.concatenate(
        [jnp.concatenate([h_all[l], c_all[l]], axis=1)
         for l in range(num_layers)], axis=1)
    feat = jnp.tanh(feat)
    return feat @ fc_w.T + fc_b


if __name__ == "__main__":
    qst_vocab_size = 20
    qst_embed_size = 32     # E == hidden so per-layer weights stack uniformly
    hidden_size = 32
    num_layers = 2
    feature_size = 16
    batch = 2
    seq_len = 8

    key = jax.random.PRNGKey(0)
    keys = jax.random.split(key, 8)

    embedding = 0.1 * jax.random.normal(
        keys[0], (qst_vocab_size, qst_embed_size), jnp.float32)
    w_ih = 0.1 * jax.random.normal(
        keys[1], (num_layers, 4 * hidden_size, hidden_size), jnp.float32)
    w_hh = 0.1 * jax.random.normal(
        keys[2], (num_layers, 4 * hidden_size, hidden_size), jnp.float32)
    b_ih = 0.1 * jax.random.normal(
        keys[3], (num_layers, 1, 4 * hidden_size), jnp.float32)
    b_hh = 0.1 * jax.random.normal(
        keys[4], (num_layers, 1, 4 * hidden_size), jnp.float32)
    fc_w = 0.1 * jax.random.normal(
        keys[5], (feature_size, 2 * num_layers * hidden_size), jnp.float32)
    fc_b = 0.1 * jax.random.normal(keys[6], (1, feature_size), jnp.float32)

    tokens = jax.random.randint(
        keys[7], (batch, seq_len), 0, qst_vocab_size, dtype=jnp.int32)

    out = qst_encoder_forward(
        tokens, embedding, w_ih, w_hh, b_ih, b_hh, fc_w, fc_b,
        num_layers=num_layers, hidden_size=hidden_size,
        feature_size=feature_size)
    out = jax.block_until_ready(out)
    assert out.shape == (batch, feature_size)

    ref = _reference(tokens, embedding, w_ih, w_hh, b_ih, b_hh, fc_w, fc_b,
                     num_layers, hidden_size)
    max_err = float(jnp.max(jnp.abs(out - ref)))
    assert max_err < 1e-2, f"mismatch vs reference: {max_err}"

    print("KERNEL_OK")
</pallas_src>

<mosaic_0001>
module attributes {stable_mosaic.version = 11 : i64} {
  func.func @qst_encoder_kernel(%arg0: memref<64x1xi32, #tpu.memory_space<vmem>>, %arg1: memref<20x128xf32, #tpu.memory_space<vmem>>, %arg2: memref<64x256xbf16, #tpu.memory_space<vmem>>, %arg3: memref<1x256xf32, #tpu.memory_space<vmem>>, %arg4: memref<128x128xf32, #tpu.memory_space<vmem>>, %arg5: memref<1x128xf32, #tpu.memory_space<vmem>>, %arg6: memref<8x128xf32, #tpu.memory_space<vmem>>, %arg7: memref<72x256xf32, #tpu.memory_space<vmem>>) attributes {dimension_semantics = [], scalar_prefetch = 0 : i64, scratch_operands = 1 : i64, tpu.core_type = #tpu.core_type<tc>} {
    %c0 = arith.constant 0 : index
    %c0_0 = arith.constant 0 : index
    %0 = vector.load %arg0[%c0, %c0_0] : memref<64x1xi32, #tpu.memory_space<vmem>>, vector<64x1xi32>
    %1 = tpu.iota {dimensions = array<i32: 1>} : vector<64x20xi32>
    %2 = vector.broadcast %0 : vector<64x1xi32> to vector<64x20xi32>
    %3 = arith.cmpi eq, %2, %1 : vector<64x20xi32>
    %4 = arith.extui %3 : vector<64x20xi1> to vector<64x20xi32>
    %5 = arith.sitofp %4 : vector<64x20xi32> to vector<64x20xf32>
    %c0_1 = arith.constant 0 : index
    %c0_2 = arith.constant 0 : index
    %6 = vector.load %arg3[%c0_1, %c0_2] : memref<1x256xf32, #tpu.memory_space<vmem>>, vector<1x256xf32>
    %7 = vector.shape_cast %6 : vector<1x256xf32> to vector<1x256xf32>
    %8 = vector.broadcast %7 : vector<1x256xf32> to vector<72x256xf32>
    %c0_3 = arith.constant 0 : index
    %c0_4 = arith.constant 0 : index
    %9 = vector.load %arg7[%c0_3, %c0_4] : memref<72x256xf32, #tpu.memory_space<vmem>>, vector<72x256xf32>
    tpu.vector_store %arg7[%c0_3, %c0_4], %8 {strides = array<i32>} : memref<72x256xf32, #tpu.memory_space<vmem>>, vector<72x256xf32>,
    %c0_5 = arith.constant 0 : index
    %c0_6 = arith.constant 0 : index
    %10 = vector.load %arg1[%c0_5, %c0_6] : memref<20x128xf32, #tpu.memory_space<vmem>>, vector<20x128xf32>
    %cst = arith.constant dense<0.000000e+00> : vector<64x128xf32>
    %11 = tpu.matmul %5, %10, %cst {dimension_numbers = #tpu.dot_dimension_numbers<[1], [0], [0], [1], [0, 0, 1, 1], [], []>} : vector<64x20xf32>, vector<20x128xf32>, vector<64x128xf32> -> vector<64x128xf32>
    %12 = vector.extract_strided_slice %6 {offsets = [0, 0], sizes = [1, 128], strides = [1, 1]} : vector<1x256xf32> to vector<1x128xf32>
    %13 = vector.broadcast %12 : vector<1x128xf32> to vector<64x128xf32>
    %14 = arith.addf %11, %13 : vector<64x128xf32>
    %c0_7 = arith.constant 0 : index
    %c0_8 = arith.constant 0 : index
    %15 = vector.load %arg7[%c0_7, %c0_8] : memref<72x256xf32, #tpu.memory_space<vmem>>, vector<64x128xf32>
    tpu.vector_store %arg7[%c0_7, %c0_8], %14 {strides = array<i32>} : memref<72x256xf32, #tpu.memory_space<vmem>>, vector<64x128xf32>,
    %cst_9 = arith.constant 0.000000e+00 : f32
    %16 = vector.broadcast %cst_9 : f32 to vector<8x32xf32>
    %cst_10 = arith.constant 0.000000e+00 : f32
    %17 = vector.broadcast %cst_10 : f32 to vector<8x32xf32>
    %cst_11 = arith.constant 0.000000e+00 : f32
    %18 = vector.broadcast %cst_11 : f32 to vector<8x32xf32>
    %cst_12 = arith.constant 0.000000e+00 : f32
    %19 = vector.broadcast %cst_12 : f32 to vector<8x32xf32>
    %20 = tpu.concatenate %16, %17 in 1 : vector<8x32xf32>, vector<8x32xf32> -> vector<8x64xf32>
    %21 = arith.truncf %20 : vector<8x64xf32> to vector<8x64xbf16>
    %c0_13 = arith.constant 0 : index
    %c0_14 = arith.constant 0 : index
    %22 = vector.load %arg2[%c0_13, %c0_14] : memref<64x256xbf16, #tpu.memory_space<vmem>>, vector<64x256xbf16>
    %cst_15 = arith.constant dense<0.000000e+00> : vector<8x256xf32>
    %23 = tpu.matmul %21, %22, %cst_15 {dimension_numbers = #tpu.dot_dimension_numbers<[1], [0], [0], [1], [0, 0, 1, 1], [], []>} : vector<8x64xbf16>, vector<64x256xbf16>, vector<8x256xf32> -> vector<8x256xf32>
    %c0_16 = arith.constant 0 : index
    %c0_17 = arith.constant 0 : index
    %24 = vector.load %arg7[%c0_16, %c0_17] : memref<72x256xf32, #tpu.memory_space<vmem>>, vector<8x256xf32>
    %25 = arith.addf %23, %24 : vector<8x256xf32>
    %26 = math.tanh %25 : vector<8x256xf32>
    %27 = vector.extract_strided_slice %26 {offsets = [0, 0], sizes = [8, 128], strides = [1, 1]} : vector<8x256xf32> to vector<8x128xf32>
    %28 = vector.extract_strided_slice %27 {offsets = [0, 0], sizes = [8, 32], strides = [1, 1]} : vector<8x128xf32> to vector<8x32xf32>
    %cst_18 = arith.constant 1.000000e+00 : f32
    %29 = vector.broadcast %cst_18 : f32 to vector<8x32xf32>
    %30 = arith.addf %28, %29 : vector<8x32xf32>
    %cst_19 = arith.constant 5.000000e-01 : f32
    %31 = vector.broadcast %cst_19 : f32 to vector<8x32xf32>
    %32 = arith.mulf %31, %30 : vector<8x32xf32>
    %33 = vector.extract_strided_slice %27 {offsets = [0, 32], sizes = [8, 32], strides = [1, 1]} : vector<8x128xf32> to vector<8x32xf32>
    %cst_20 = arith.constant 1.000000e+00 : f32
    %34 = vector.broadcast %cst_20 : f32 to vector<8x32xf32>
    %35 = arith.addf %33, %34 : vector<8x32xf32>
    %cst_21 = arith.constant 5.000000e-01 : f32
    %36 = vector.broadcast %cst_21 : f32 to vector<8x32xf32>
    %37 = arith.mulf %36, %35 : vector<8x32xf32>
    %38 = vector.extract_strided_slice %27 {offsets = [0, 64], sizes = [8, 32], strides = [1, 1]} : vector<8x128xf32> to vector<8x32xf32>
    %39 = vector.extract_strided_slice %27 {offsets = [0, 96], sizes = [8, 32], strides = [1, 1]} : vector<8x128xf32> to vector<8x32xf32>
    %cst_22 = arith.constant 1.000000e+00 : f32
    %40 = vector.broadcast %cst_22 : f32 to vector<8x32xf32>
    %41 = arith.addf %39, %40 : vector<8x32xf32>
    %cst_23 = arith.constant 5.000000e-01 : f32
    %42 = vector.broadcast %cst_23 : f32 to vector<8x32xf32>
    %43 = arith.mulf %42, %41 : vector<8x32xf32>
    %44 = arith.mulf %37, %18 : vector<8x32xf32>
    %45 = arith.mulf %32, %38 : vector<8x32xf32>
    %46 = arith.addf %44, %45 : vector<8x32xf32>
    %47 = math.tanh %46 : vector<8x32xf32>
    %48 = arith.mulf %43, %47 : vector<8x32xf32>
    %49 = tpu.concatenate %48, %17 in 1 : vector<8x32xf32>, vector<8x32xf32> -> vector<8x64xf32>
    %50 = arith.truncf %49 : vector<8x64xf32> to vector<8x64xbf16>
    %c0_24 = arith.constant 0 : index
    %c0_25 = arith.constant 0 : index
    %51 = vector.load %arg2[%c0_24, %c0_25] : memref<64x256xbf16, #tpu.memory_space<vmem>>, vector<64x256xbf16>
    %cst_26 = arith.constant dense<0.000000e+00> : vector<8x256xf32>
    %52 = tpu.matmul %50, %51, %cst_26 {dimension_numbers = #tpu.dot_dimension_numbers<[1], [0], [0], [1], [0, 0, 1, 1], [], []>} : vector<8x64xbf16>, vector<64x256xbf16>, vector<8x256xf32> -> vector<8x256xf32>
    %c8 = arith.constant 8 : index
    %c0_27 = arith.constant 0 : index
    %53 = vector.load %arg7[%c8, %c0_27] : memref<72x256xf32, #tpu.memory_space<vmem>>, vector<8x256xf32>
    %54 = arith.addf %52, %53 : vector<8x256xf32>
    %55 = math.tanh %54 : vector<8x256xf32>
    %56 = vector.extract_strided_slice %55 {offsets = [0, 0], sizes = [8, 128], strides = [1, 1]} : vector<8x256xf32> to vector<8x128xf32>
    %57 = vector.extract_strided_slice %56 {offsets = [0, 0], sizes = [8, 32], strides = [1, 1]} : vector<8x128xf32> to vector<8x32xf32>
    %cst_28 = arith.constant 1.000000e+00 : f32
    %58 = vector.broadcast %cst_28 : f32 to vector<8x32xf32>
    %59 = arith.addf %57, %58 : vector<8x32xf32>
    %cst_29 = arith.constant 5.000000e-01 : f32
    %60 = vector.broadcast %cst_29 : f32 to vector<8x32xf32>
    %61 = arith.mulf %60, %59 : vector<8x32xf32>
    %62 = vector.extract_strided_slice %56 {offsets = [0, 32], sizes = [8, 32], strides = [1, 1]} : vector<8x128xf32> to vector<8x32xf32>
    %cst_30 = arith.constant 1.000000e+00 : f32
    %63 = vector.broadcast %cst_30 : f32 to vector<8x32xf32>
    %64 = arith.addf %62, %63 : vector<8x32xf32>
    %cst_31 = arith.constant 5.000000e-01 : f32
    %65 = vector.broadcast %cst_31 : f32 to vector<8x32xf32>
    %66 = arith.mulf %65, %64 : vector<8x32xf32>
    %67 = vector.extract_strided_slice %56 {offsets = [0, 64], sizes = [8, 32], strides = [1, 1]} : vector<8x128xf32> to vector<8x32xf32>
    %68 = vector.extract_strided_slice %56 {offsets = [0, 96], sizes = [8, 32], strides = [1, 1]} : vector<8x128xf32> to vector<8x32xf32>
    %cst_32 = arith.constant 1.000000e+00 : f32
    %69 = vector.broadcast %cst_32 : f32 to vector<8x32xf32>
    %70 = arith.addf %68, %69 : vector<8x32xf32>
    %cst_33 = arith.constant 5.000000e-01 : f32
    %71 = vector.broadcast %cst_33 : f32 to vector<8x32xf32>
    %72 = arith.mulf %71, %70 : vector<8x32xf32>
    %73 = arith.mulf %66, %46 : vector<8x32xf32>
    %74 = arith.mulf %61, %67 : vector<8x32xf32>
    %75 = arith.addf %73, %74 : vector<8x32xf32>
    %76 = math.tanh %75 : vector<8x32xf32>
    %77 = arith.mulf %72, %76 : vector<8x32xf32>
    %78 = vector.extract_strided_slice %55 {offsets = [0, 128], sizes = [8, 128], strides = [1, 1]} : vector<8x256xf32> to vector<8x128xf32>
    %79 = vector.extract_strided_slice %78 {offsets = [0, 0], sizes = [8, 32], strides = [1, 1]} : vector<8x128xf32> to vector<8x32xf32>
    %cst_34 = arith.constant 1.000000e+00 : f32
    %80 = vector.broadcast %cst_34 : f32 to vector<8x32xf32>
    %81 = arith.addf %79, %80 : vector<8x32xf32>
    %cst_35 = arith.constant 5.000000e-01 : f32
    %82 = vector.broadcast %cst_35 : f32 to vector<8x32xf32>
    %83 = arith.mulf %82, %81 : vector<8x32xf32>
    %84 = vector.extract_strided_slice %78 {offsets = [0, 32], sizes = [8, 32], strides = [1, 1]} : vector<8x128xf32> to vector<8x32xf32>
    %cst_36 = arith.constant 1.000000e+00 : f32
    %85 = vector.broadcast %cst_36 : f32 to vector<8x32xf32>
    %86 = arith.addf %84, %85 : vector<8x32xf32>
    %cst_37 = arith.constant 5.000000e-01 : f32
    %87 = vector.broadcast %cst_37 : f32 to vector<8x32xf32>
    %88 = arith.mulf %87, %86 : vector<8x32xf32>
    %89 = vector.extract_strided_slice %78 {offsets = [0, 64], sizes = [8, 32], strides = [1, 1]} : vector<8x128xf32> to vector<8x32xf32>
    %90 = vector.extract_strided_slice %78 {offsets = [0, 96], sizes = [8, 32], strides = [1, 1]} : vector<8x128xf32> to vector<8x32xf32>
    %cst_38 = arith.constant 1.000000e+00 : f32
    %91 = vector.broadcast %cst_38 : f32 to vector<8x32xf32>
    %92 = arith.addf %90, %91 : vector<8x32xf32>
    %cst_39 = arith.constant 5.000000e-01 : f32
    %93 = vector.broadcast %cst_39 : f32 to vector<8x32xf32>
    %94 = arith.mulf %93, %92 : vector<8x32xf32>
    %95 = arith.mulf %88, %19 : vector<8x32xf32>
    %96 = arith.mulf %83, %89 : vector<8x32xf32>
    %97 = arith.addf %95, %96 : vector<8x32xf32>
    %98 = math.tanh %97 : vector<8x32xf32>
    %99 = arith.mulf %94, %98 : vector<8x32xf32>
    %100 = tpu.concatenate %77, %99 in 1 : vector<8x32xf32>, vector<8x32xf32> -> vector<8x64xf32>
    %101 = arith.truncf %100 : vector<8x64xf32> to vector<8x64xbf16>
    %c0_40 = arith.constant 0 : index
    %c0_41 = arith.constant 0 : index
    %102 = vector.load %arg2[%c0_40, %c0_41] : memref<64x256xbf16, #tpu.memory_space<vmem>>, vector<64x256xbf16>
    %cst_42 = arith.constant dense<0.000000e+00> : vector<8x256xf32>
    %103 = tpu.matmul %101, %102, %cst_42 {dimension_numbers = #tpu.dot_dimension_numbers<[1], [0], [0], [1], [0, 0, 1, 1], [], []>} : vector<8x64xbf16>, vector<64x256xbf16>, vector<8x256xf32> -> vector<8x256xf32>
    %c16 = arith.constant 16 : index
    %c0_43 = arith.constant 0 : index
    %104 = vector.load %arg7[%c16, %c0_43] : memref<72x256xf32, #tpu.memory_space<vmem>>, vector<8x256xf32>
    %105 = arith.addf %103, %104 : vector<8x256xf32>
    %106 = math.tanh %105 : vector<8x256xf32>
    %107 = vector.extract_strided_slice %106 {offsets = [0, 0], sizes = [8, 128], strides = [1, 1]} : vector<8x256xf32> to vector<8x128xf32>
    %108 = vector.extract_strided_slice %107 {offsets = [0, 0], sizes = [8, 32], strides = [1, 1]} : vector<8x128xf32> to vector<8x32xf32>
    %cst_44 = arith.constant 1.000000e+00 : f32
    %109 = vector.broadcast %cst_44 : f32 to vector<8x32xf32>
    %110 = arith.addf %108, %109 : vector<8x32xf32>
    %cst_45 = arith.constant 5.000000e-01 : f32
    %111 = vector.broadcast %cst_45 : f32 to vector<8x32xf32>
    %112 = arith.mulf %111, %110 : vector<8x32xf32>
    %113 = vector.extract_strided_slice %107 {offsets = [0, 32], sizes = [8, 32], strides = [1, 1]} : vector<8x128xf32> to vector<8x32xf32>
    %cst_46 = arith.constant 1.000000e+00 : f32
    %114 = vector.broadcast %cst_46 : f32 to vector<8x32xf32>
    %115 = arith.addf %113, %114 : vector<8x32xf32>
    %cst_47 = arith.constant 5.000000e-01 : f32
    %116 = vector.broadcast %cst_47 : f32 to vector<8x32xf32>
    %117 = arith.mulf %116, %115 : vector<8x32xf32>
    %118 = vector.extract_strided_slice %107 {offsets = [0, 64], sizes = [8, 32], strides = [1, 1]} : vector<8x128xf32> to vector<8x32xf32>
    %119 = vector.extract_strided_slice %107 {offsets = [0, 96], sizes = [8, 32], strides = [1, 1]} : vector<8x128xf32> to vector<8x32xf32>
    %cst_48 = arith.constant 1.000000e+00 : f32
    %120 = vector.broadcast %cst_48 : f32 to vector<8x32xf32>
    %121 = arith.addf %119, %120 : vector<8x32xf32>
    %cst_49 = arith.constant 5.000000e-01 : f32
    %122 = vector.broadcast %cst_49 : f32 to vector<8x32xf32>
    %123 = arith.mulf %122, %121 : vector<8x32xf32>
    %124 = arith.mulf %117, %75 : vector<8x32xf32>
    %125 = arith.mulf %112, %118 : vector<8x32xf32>
    %126 = arith.addf %124, %125 : vector<8x32xf32>
    %127 = math.tanh %126 : vector<8x32xf32>
    %128 = arith.mulf %123, %127 : vector<8x32xf32>
    %129 = vector.extract_strided_slice %106 {offsets = [0, 128], sizes = [8, 128], strides = [1, 1]} : vector<8x256xf32> to vector<8x128xf32>
    %130 = vector.extract_strided_slice %129 {offsets = [0, 0], sizes = [8, 32], strides = [1, 1]} : vector<8x128xf32> to vector<8x32xf32>
    %cst_50 = arith.constant 1.000000e+00 : f32
    %131 = vector.broadcast %cst_50 : f32 to vector<8x32xf32>
    %132 = arith.addf %130, %131 : vector<8x32xf32>
    %cst_51 = arith.constant 5.000000e-01 : f32
    %133 = vector.broadcast %cst_51 : f32 to vector<8x32xf32>
    %134 = arith.mulf %133, %132 : vector<8x32xf32>
    %135 = vector.extract_strided_slice %129 {offsets = [0, 32], sizes = [8, 32], strides = [1, 1]} : vector<8x128xf32> to vector<8x32xf32>
    %cst_52 = arith.constant 1.000000e+00 : f32
    %136 = vector.broadcast %cst_52 : f32 to vector<8x32xf32>
    %137 = arith.addf %135, %136 : vector<8x32xf32>
    %cst_53 = arith.constant 5.000000e-01 : f32
    %138 = vector.broadcast %cst_53 : f32 to vector<8x32xf32>
    %139 = arith.mulf %138, %137 : vector<8x32xf32>
    %140 = vector.extract_strided_slice %129 {offsets = [0, 64], sizes = [8, 32], strides = [1, 1]} : vector<8x128xf32> to vector<8x32xf32>
    %141 = vector.extract_strided_slice %129 {offsets = [0, 96], sizes = [8, 32], strides = [1, 1]} : vector<8x128xf32> to vector<8x32xf32>
    %cst_54 = arith.constant 1.000000e+00 : f32
    %142 = vector.broadcast %cst_54 : f32 to vector<8x32xf32>
    %143 = arith.addf %141, %142 : vector<8x32xf32>
    %cst_55 = arith.constant 5.000000e-01 : f32
    %144 = vector.broadcast %cst_55 : f32 to vector<8x32xf32>
    %145 = arith.mulf %144, %143 : vector<8x32xf32>
    %146 = arith.mulf %139, %97 : vector<8x32xf32>
    %147 = arith.mulf %134, %140 : vector<8x32xf32>
    %148 = arith.addf %146, %147 : vector<8x32xf32>
    %149 = math.tanh %148 : vector<8x32xf32>
    %150 = arith.mulf %145, %149 : vector<8x32xf32>
    %151 = tpu.concatenate %128, %150 in 1 : vector<8x32xf32>, vector<8x32xf32> -> vector<8x64xf32>
    %152 = arith.truncf %151 : vector<8x64xf32> to vector<8x64xbf16>
    %c0_56 = arith.constant 0 : index
    %c0_57 = arith.constant 0 : index
    %153 = vector.load %arg2[%c0_56, %c0_57] : memref<64x256xbf16, #tpu.memory_space<vmem>>, vector<64x256xbf16>
    %cst_58 = arith.constant dense<0.000000e+00> : vector<8x256xf32>
    %154 = tpu.matmul %152, %153, %cst_58 {dimension_numbers = #tpu.dot_dimension_numbers<[1], [0], [0], [1], [0, 0, 1, 1], [], []>} : vector<8x64xbf16>, vector<64x256xbf16>, vector<8x256xf32> -> vector<8x256xf32>
    %c24 = arith.constant 24 : index
    %c0_59 = arith.constant 0 : index
    %155 = vector.load %arg7[%c24, %c0_59] : memref<72x256xf32, #tpu.memory_space<vmem>>, vector<8x256xf32>
    %156 = arith.addf %154, %155 : vector<8x256xf32>
    %157 = math.tanh %156 : vector<8x256xf32>
    %158 = vector.extract_strided_slice %157 {offsets = [0, 0], sizes = [8, 128], strides = [1, 1]} : vector<8x256xf32> to vector<8x128xf32>
    %159 = vector.extract_strided_slice %158 {offsets = [0, 0], sizes = [8, 32], strides = [1, 1]} : vector<8x128xf32> to vector<8x32xf32>
    %cst_60 = arith.constant 1.000000e+00 : f32
    %160 = vector.broadcast %cst_60 : f32 to vector<8x32xf32>
    %161 = arith.addf %159, %160 : vector<8x32xf32>
    %cst_61 = arith.constant 5.000000e-01 : f32
    %162 = vector.broadcast %cst_61 : f32 to vector<8x32xf32>
    %163 = arith.mulf %162, %161 : vector<8x32xf32>
    %164 = vector.extract_strided_slice %158 {offsets = [0, 32], sizes = [8, 32], strides = [1, 1]} : vector<8x128xf32> to vector<8x32xf32>
    %cst_62 = arith.constant 1.000000e+00 : f32
    %165 = vector.broadcast %cst_62 : f32 to vector<8x32xf32>
    %166 = arith.addf %164, %165 : vector<8x32xf32>
    %cst_63 = arith.constant 5.000000e-01 : f32
    %167 = vector.broadcast %cst_63 : f32 to vector<8x32xf32>
    %168 = arith.mulf %167, %166 : vector<8x32xf32>
    %169 = vector.extract_strided_slice %158 {offsets = [0, 64], sizes = [8, 32], strides = [1, 1]} : vector<8x128xf32> to vector<8x32xf32>
    %170 = vector.extract_strided_slice %158 {offsets = [0, 96], sizes = [8, 32], strides = [1, 1]} : vector<8x128xf32> to vector<8x32xf32>
    %cst_64 = arith.constant 1.000000e+00 : f32
    %171 = vector.broadcast %cst_64 : f32 to vector<8x32xf32>
    %172 = arith.addf %170, %171 : vector<8x32xf32>
    %cst_65 = arith.constant 5.000000e-01 : f32
    %173 = vector.broadcast %cst_65 : f32 to vector<8x32xf32>
    %174 = arith.mulf %173, %172 : vector<8x32xf32>
    %175 = arith.mulf %168, %126 : vector<8x32xf32>
    %176 = arith.mulf %163, %169 : vector<8x32xf32>
    %177 = arith.addf %175, %176 : vector<8x32xf32>
    %178 = math.tanh %177 : vector<8x32xf32>
    %179 = arith.mulf %174, %178 : vector<8x32xf32>
    %180 = vector.extract_strided_slice %157 {offsets = [0, 128], sizes = [8, 128], strides = [1, 1]} : vector<8x256xf32> to vector<8x128xf32>
    %181 = vector.extract_strided_slice %180 {offsets = [0, 0], sizes = [8, 32], strides = [1, 1]} : vector<8x128xf32> to vector<8x32xf32>
    %cst_66 = arith.constant 1.000000e+00 : f32
    %182 = vector.broadcast %cst_66 : f32 to vector<8x32xf32>
    %183 = arith.addf %181, %182 : vector<8x32xf32>
    %cst_67 = arith.constant 5.000000e-01 : f32
    %184 = vector.broadcast %cst_67 : f32 to vector<8x32xf32>
    %185 = arith.mulf %184, %183 : vector<8x32xf32>
    %186 = vector.extract_strided_slice %180 {offsets = [0, 32], sizes = [8, 32], strides = [1, 1]} : vector<8x128xf32> to vector<8x32xf32>
    %cst_68 = arith.constant 1.000000e+00 : f32
    %187 = vector.broadcast %cst_68 : f32 to vector<8x32xf32>
    %188 = arith.addf %186, %187 : vector<8x32xf32>
    %cst_69 = arith.constant 5.000000e-01 : f32
    %189 = vector.broadcast %cst_69 : f32 to vector<8x32xf32>
    %190 = arith.mulf %189, %188 : vector<8x32xf32>
    %191 = vector.extract_strided_slice %180 {offsets = [0, 64], sizes = [8, 32], strides = [1, 1]} : vector<8x128xf32> to vector<8x32xf32>
    %192 = vector.extract_strided_slice %180 {offsets = [0, 96], sizes = [8, 32], strides = [1, 1]} : vector<8x128xf32> to vector<8x32xf32>
    %cst_70 = arith.constant 1.000000e+00 : f32
    %193 = vector.broadcast %cst_70 : f32 to vector<8x32xf32>
    %194 = arith.addf %192, %193 : vector<8x32xf32>
    %cst_71 = arith.constant 5.000000e-01 : f32
    %195 = vector.broadcast %cst_71 : f32 to vector<8x32xf32>
    %196 = arith.mulf %195, %194 : vector<8x32xf32>
    %197 = arith.mulf %190, %148 : vector<8x32xf32>
    %198 = arith.mulf %185, %191 : vector<8x32xf32>
    %199 = arith.addf %197, %198 : vector<8x32xf32>
    %200 = math.tanh %199 : vector<8x32xf32>
    %201 = arith.mulf %196, %200 : vector<8x32xf32>
    %202 = tpu.concatenate %179, %201 in 1 : vector<8x32xf32>, vector<8x32xf32> -> vector<8x64xf32>
    %203 = arith.truncf %202 : vector<8x64xf32> to vector<8x64xbf16>
    %c0_72 = arith.constant 0 : index
    %c0_73 = arith.constant 0 : index
    %204 = vector.load %arg2[%c0_72, %c0_73] : memref<64x256xbf16, #tpu.memory_space<vmem>>, vector<64x256xbf16>
    %cst_74 = arith.constant dense<0.000000e+00> : vector<8x256xf32>
    %205 = tpu.matmul %203, %204, %cst_74 {dimension_numbers = #tpu.dot_dimension_numbers<[1], [0], [0], [1], [0, 0, 1, 1], [], []>} : vector<8x64xbf16>, vector<64x256xbf16>, vector<8x256xf32> -> vector<8x256xf32>
    %c32 = arith.constant 32 : index
    %c0_75 = arith.constant 0 : index
    %206 = vector.load %arg7[%c32, %c0_75] : memref<72x256xf32, #tpu.memory_space<vmem>>, vector<8x256xf32>
    %207 = arith.addf %205, %206 : vector<8x256xf32>
    %208 = math.tanh %207 : vector<8x256xf32>
    %209 = vector.extract_strided_slice %208 {offsets = [0, 0], sizes = [8, 128], strides = [1, 1]} : vector<8x256xf32> to vector<8x128xf32>
    %210 = vector.extract_strided_slice %209 {offsets = [0, 0], sizes = [8, 32], strides = [1, 1]} : vector<8x128xf32> to vector<8x32xf32>
    %cst_76 = arith.constant 1.000000e+00 : f32
    %211 = vector.broadcast %cst_76 : f32 to vector<8x32xf32>
    %212 = arith.addf %210, %211 : vector<8x32xf32>
    %cst_77 = arith.constant 5.000000e-01 : f32
    %213 = vector.broadcast %cst_77 : f32 to vector<8x32xf32>
    %214 = arith.mulf %213, %212 : vector<8x32xf32>
    %215 = vector.extract_strided_slice %209 {offsets = [0, 32], sizes = [8, 32], strides = [1, 1]} : vector<8x128xf32> to vector<8x32xf32>
    %cst_78 = arith.constant 1.000000e+00 : f32
    %216 = vector.broadcast %cst_78 : f32 to vector<8x32xf32>
    %217 = arith.addf %215, %216 : vector<8x32xf32>
    %cst_79 = arith.constant 5.000000e-01 : f32
    %218 = vector.broadcast %cst_79 : f32 to vector<8x32xf32>
    %219 = arith.mulf %218, %217 : vector<8x32xf32>
    %220 = vector.extract_strided_slice %209 {offsets = [0, 64], sizes = [8, 32], strides = [1, 1]} : vector<8x128xf32> to vector<8x32xf32>
    %221 = vector.extract_strided_slice %209 {offsets = [0, 96], sizes = [8, 32], strides = [1, 1]} : vector<8x128xf32> to vector<8x32xf32>
    %cst_80 = arith.constant 1.000000e+00 : f32
    %222 = vector.broadcast %cst_80 : f32 to vector<8x32xf32>
    %223 = arith.addf %221, %222 : vector<8x32xf32>
    %cst_81 = arith.constant 5.000000e-01 : f32
    %224 = vector.broadcast %cst_81 : f32 to vector<8x32xf32>
    %225 = arith.mulf %224, %223 : vector<8x32xf32>
    %226 = arith.mulf %219, %177 : vector<8x32xf32>
    %227 = arith.mulf %214, %220 : vector<8x32xf32>
    %228 = arith.addf %226, %227 : vector<8x32xf32>
    %229 = math.tanh %228 : vector<8x32xf32>
    %230 = arith.mulf %225, %229 : vector<8x32xf32>
    %231 = vector.extract_strided_slice %208 {offsets = [0, 128], sizes = [8, 128], strides = [1, 1]} : vector<8x256xf32> to vector<8x128xf32>
    %232 = vector.extract_strided_slice %231 {offsets = [0, 0], sizes = [8, 32], strides = [1, 1]} : vector<8x128xf32> to vector<8x32xf32>
    %cst_82 = arith.constant 1.000000e+00 : f32
    %233 = vector.broadcast %cst_82 : f32 to vector<8x32xf32>
    %234 = arith.addf %232, %233 : vector<8x32xf32>
    %cst_83 = arith.constant 5.000000e-01 : f32
    %235 = vector.broadcast %cst_83 : f32 to vector<8x32xf32>
    %236 = arith.mulf %235, %234 : vector<8x32xf32>
    %237 = vector.extract_strided_slice %231 {offsets = [0, 32], sizes = [8, 32], strides = [1, 1]} : vector<8x128xf32> to vector<8x32xf32>
    %cst_84 = arith.constant 1.000000e+00 : f32
    %238 = vector.broadcast %cst_84 : f32 to vector<8x32xf32>
    %239 = arith.addf %237, %238 : vector<8x32xf32>
    %cst_85 = arith.constant 5.000000e-01 : f32
    %240 = vector.broadcast %cst_85 : f32 to vector<8x32xf32>
    %241 = arith.mulf %240, %239 : vector<8x32xf32>
    %242 = vector.extract_strided_slice %231 {offsets = [0, 64], sizes = [8, 32], strides = [1, 1]} : vector<8x128xf32> to vector<8x32xf32>
    %243 = vector.extract_strided_slice %231 {offsets = [0, 96], sizes = [8, 32], strides = [1, 1]} : vector<8x128xf32> to vector<8x32xf32>
    %cst_86 = arith.constant 1.000000e+00 : f32
    %244 = vector.broadcast %cst_86 : f32 to vector<8x32xf32>
    %245 = arith.addf %243, %244 : vector<8x32xf32>
    %cst_87 = arith.constant 5.000000e-01 : f32
    %246 = vector.broadcast %cst_87 : f32 to vector<8x32xf32>
    %247 = arith.mulf %246, %245 : vector<8x32xf32>
    %248 = arith.mulf %241, %199 : vector<8x32xf32>
    %249 = arith.mulf %236, %242 : vector<8x32xf32>
    %250 = arith.addf %248, %249 : vector<8x32xf32>
    %251 = math.tanh %250 : vector<8x32xf32>
    %252 = arith.mulf %247, %251 : vector<8x32xf32>
    %253 = tpu.concatenate %230, %252 in 1 : vector<8x32xf32>, vector<8x32xf32> -> vector<8x64xf32>
    %254 = arith.truncf %253 : vector<8x64xf32> to vector<8x64xbf16>
    %c0_88 = arith.constant 0 : index
    %c0_89 = arith.constant 0 : index
    %255 = vector.load %arg2[%c0_88, %c0_89] : memref<64x256xbf16, #tpu.memory_space<vmem>>, vector<64x256xbf16>
    %cst_90 = arith.constant dense<0.000000e+00> : vector<8x256xf32>
    %256 = tpu.matmul %254, %255, %cst_90 {dimension_numbers = #tpu.dot_dimension_numbers<[1], [0], [0], [1], [0, 0, 1, 1], [], []>} : vector<8x64xbf16>, vector<64x256xbf16>, vector<8x256xf32> -> vector<8x256xf32>
    %c40 = arith.constant 40 : index
    %c0_91 = arith.constant 0 : index
    %257 = vector.load %arg7[%c40, %c0_91] : memref<72x256xf32, #tpu.memory_space<vmem>>, vector<8x256xf32>
    %258 = arith.addf %256, %257 : vector<8x256xf32>
    %259 = math.tanh %258 : vector<8x256xf32>
    %260 = vector.extract_strided_slice %259 {offsets = [0, 0], sizes = [8, 128], strides = [1, 1]} : vector<8x256xf32> to vector<8x128xf32>
    %261 = vector.extract_strided_slice %260 {offsets = [0, 0], sizes = [8, 32], strides = [1, 1]} : vector<8x128xf32> to vector<8x32xf32>
    %cst_92 = arith.constant 1.000000e+00 : f32
    %262 = vector.broadcast %cst_92 : f32 to vector<8x32xf32>
    %263 = arith.addf %261, %262 : vector<8x32xf32>
    %cst_93 = arith.constant 5.000000e-01 : f32
    %264 = vector.broadcast %cst_93 : f32 to vector<8x32xf32>
    %265 = arith.mulf %264, %263 : vector<8x32xf32>
    %266 = vector.extract_strided_slice %260 {offsets = [0, 32], sizes = [8, 32], strides = [1, 1]} : vector<8x128xf32> to vector<8x32xf32>
    %cst_94 = arith.constant 1.000000e+00 : f32
    %267 = vector.broadcast %cst_94 : f32 to vector<8x32xf32>
    %268 = arith.addf %266, %267 : vector<8x32xf32>
    %cst_95 = arith.constant 5.000000e-01 : f32
    %269 = vector.broadcast %cst_95 : f32 to vector<8x32xf32>
    %270 = arith.mulf %269, %268 : vector<8x32xf32>
    %271 = vector.extract_strided_slice %260 {offsets = [0, 64], sizes = [8, 32], strides = [1, 1]} : vector<8x128xf32> to vector<8x32xf32>
    %272 = vector.extract_strided_slice %260 {offsets = [0, 96], sizes = [8, 32], strides = [1, 1]} : vector<8x128xf32> to vector<8x32xf32>
    %cst_96 = arith.constant 1.000000e+00 : f32
    %273 = vector.broadcast %cst_96 : f32 to vector<8x32xf32>
    %274 = arith.addf %272, %273 : vector<8x32xf32>
    %cst_97 = arith.constant 5.000000e-01 : f32
    %275 = vector.broadcast %cst_97 : f32 to vector<8x32xf32>
    %276 = arith.mulf %275, %274 : vector<8x32xf32>
    %277 = arith.mulf %270, %228 : vector<8x32xf32>
    %278 = arith.mulf %265, %271 : vector<8x32xf32>
    %279 = arith.addf %277, %278 : vector<8x32xf32>
    %280 = math.tanh %279 : vector<8x32xf32>
    %281 = arith.mulf %276, %280 : vector<8x32xf32>
    %282 = vector.extract_strided_slice %259 {offsets = [0, 128], sizes = [8, 128], strides = [1, 1]} : vector<8x256xf32> to vector<8x128xf32>
    %283 = vector.extract_strided_slice %282 {offsets = [0, 0], sizes = [8, 32], strides = [1, 1]} : vector<8x128xf32> to vector<8x32xf32>
    %cst_98 = arith.constant 1.000000e+00 : f32
    %284 = vector.broadcast %cst_98 : f32 to vector<8x32xf32>
    %285 = arith.addf %283, %284 : vector<8x32xf32>
    %cst_99 = arith.constant 5.000000e-01 : f32
    %286 = vector.broadcast %cst_99 : f32 to vector<8x32xf32>
    %287 = arith.mulf %286, %285 : vector<8x32xf32>
    %288 = vector.extract_strided_slice %282 {offsets = [0, 32], sizes = [8, 32], strides = [1, 1]} : vector<8x128xf32> to vector<8x32xf32>
    %cst_100 = arith.constant 1.000000e+00 : f32
    %289 = vector.broadcast %cst_100 : f32 to vector<8x32xf32>
    %290 = arith.addf %288, %289 : vector<8x32xf32>
    %cst_101 = arith.constant 5.000000e-01 : f32
    %291 = vector.broadcast %cst_101 : f32 to vector<8x32xf32>
    %292 = arith.mulf %291, %290 : vector<8x32xf32>
    %293 = vector.extract_strided_slice %282 {offsets = [0, 64], sizes = [8, 32], strides = [1, 1]} : vector<8x128xf32> to vector<8x32xf32>
    %294 = vector.extract_strided_slice %282 {offsets = [0, 96], sizes = [8, 32], strides = [1, 1]} : vector<8x128xf32> to vector<8x32xf32>
    %cst_102 = arith.constant 1.000000e+00 : f32
    %295 = vector.broadcast %cst_102 : f32 to vector<8x32xf32>
    %296 = arith.addf %294, %295 : vector<8x32xf32>
    %cst_103 = arith.constant 5.000000e-01 : f32
    %297 = vector.broadcast %cst_103 : f32 to vector<8x32xf32>
    %298 = arith.mulf %297, %296 : vector<8x32xf32>
    %299 = arith.mulf %292, %250 : vector<8x32xf32>
    %300 = arith.mulf %287, %293 : vector<8x32xf32>
    %301 = arith.addf %299, %300 : vector<8x32xf32>
    %302 = math.tanh %301 : vector<8x32xf32>
    %303 = arith.mulf %298, %302 : vector<8x32xf32>
    %304 = tpu.concatenate %281, %303 in 1 : vector<8x32xf32>, vector<8x32xf32> -> vector<8x64xf32>
    %305 = arith.truncf %304 : vector<8x64xf32> to vector<8x64xbf16>
    %c0_104 = arith.constant 0 : index
    %c0_105 = arith.constant 0 : index
    %306 = vector.load %arg2[%c0_104, %c0_105] : memref<64x256xbf16, #tpu.memory_space<vmem>>, vector<64x256xbf16>
    %cst_106 = arith.constant dense<0.000000e+00> : vector<8x256xf32>
    %307 = tpu.matmul %305, %306, %cst_106 {dimension_numbers = #tpu.dot_dimension_numbers<[1], [0], [0], [1], [0, 0, 1, 1], [], []>} : vector<8x64xbf16>, vector<64x256xbf16>, vector<8x256xf32> -> vector<8x256xf32>
    %c48 = arith.constant 48 : index
    %c0_107 = arith.constant 0 : index
    %308 = vector.load %arg7[%c48, %c0_107] : memref<72x256xf32, #tpu.memory_space<vmem>>, vector<8x256xf32>
    %309 = arith.addf %307, %308 : vector<8x256xf32>
    %310 = math.tanh %309 : vector<8x256xf32>
    %311 = vector.extract_strided_slice %310 {offsets = [0, 0], sizes = [8, 128], strides = [1, 1]} : vector<8x256xf32> to vector<8x128xf32>
    %312 = vector.extract_strided_slice %311 {offsets = [0, 0], sizes = [8, 32], strides = [1, 1]} : vector<8x128xf32> to vector<8x32xf32>
    %cst_108 = arith.constant 1.000000e+00 : f32
    %313 = vector.broadcast %cst_108 : f32 to vector<8x32xf32>
    %314 = arith.addf %312, %313 : vector<8x32xf32>
    %cst_109 = arith.constant 5.000000e-01 : f32
    %315 = vector.broadcast %cst_109 : f32 to vector<8x32xf32>
    %316 = arith.mulf %315, %314 : vector<8x32xf32>
    %317 = vector.extract_strided_slice %311 {offsets = [0, 32], sizes = [8, 32], strides = [1, 1]} : vector<8x128xf32> to vector<8x32xf32>
    %cst_110 = arith.constant 1.000000e+00 : f32
    %318 = vector.broadcast %cst_110 : f32 to vector<8x32xf32>
    %319 = arith.addf %317, %318 : vector<8x32xf32>
    %cst_111 = arith.constant 5.000000e-01 : f32
    %320 = vector.broadcast %cst_111 : f32 to vector<8x32xf32>
    %321 = arith.mulf %320, %319 : vector<8x32xf32>
    %322 = vector.extract_strided_slice %311 {offsets = [0, 64], sizes = [8, 32], strides = [1, 1]} : vector<8x128xf32> to vector<8x32xf32>
    %323 = vector.extract_strided_slice %311 {offsets = [0, 96], sizes = [8, 32], strides = [1, 1]} : vector<8x128xf32> to vector<8x32xf32>
    %cst_112 = arith.constant 1.000000e+00 : f32
    %324 = vector.broadcast %cst_112 : f32 to vector<8x32xf32>
    %325 = arith.addf %323, %324 : vector<8x32xf32>
    %cst_113 = arith.constant 5.000000e-01 : f32
    %326 = vector.broadcast %cst_113 : f32 to vector<8x32xf32>
    %327 = arith.mulf %326, %325 : vector<8x32xf32>
    %328 = arith.mulf %321, %279 : vector<8x32xf32>
    %329 = arith.mulf %316, %322 : vector<8x32xf32>
    %330 = arith.addf %328, %329 : vector<8x32xf32>
    %331 = math.tanh %330 : vector<8x32xf32>
    %332 = arith.mulf %327, %331 : vector<8x32xf32>
    %333 = vector.extract_strided_slice %310 {offsets = [0, 128], sizes = [8, 128], strides = [1, 1]} : vector<8x256xf32> to vector<8x128xf32>
    %334 = vector.extract_strided_slice %333 {offsets = [0, 0], sizes = [8, 32], strides = [1, 1]} : vector<8x128xf32> to vector<8x32xf32>
    %cst_114 = arith.constant 1.000000e+00 : f32
    %335 = vector.broadcast %cst_114 : f32 to vector<8x32xf32>
    %336 = arith.addf %334, %335 : vector<8x32xf32>
    %cst_115 = arith.constant 5.000000e-01 : f32
    %337 = vector.broadcast %cst_115 : f32 to vector<8x32xf32>
    %338 = arith.mulf %337, %336 : vector<8x32xf32>
    %339 = vector.extract_strided_slice %333 {offsets = [0, 32], sizes = [8, 32], strides = [1, 1]} : vector<8x128xf32> to vector<8x32xf32>
    %cst_116 = arith.constant 1.000000e+00 : f32
    %340 = vector.broadcast %cst_116 : f32 to vector<8x32xf32>
    %341 = arith.addf %339, %340 : vector<8x32xf32>
    %cst_117 = arith.constant 5.000000e-01 : f32
    %342 = vector.broadcast %cst_117 : f32 to vector<8x32xf32>
    %343 = arith.mulf %342, %341 : vector<8x32xf32>
    %344 = vector.extract_strided_slice %333 {offsets = [0, 64], sizes = [8, 32], strides = [1, 1]} : vector<8x128xf32> to vector<8x32xf32>
    %345 = vector.extract_strided_slice %333 {offsets = [0, 96], sizes = [8, 32], strides = [1, 1]} : vector<8x128xf32> to vector<8x32xf32>
    %cst_118 = arith.constant 1.000000e+00 : f32
    %346 = vector.broadcast %cst_118 : f32 to vector<8x32xf32>
    %347 = arith.addf %345, %346 : vector<8x32xf32>
    %cst_119 = arith.constant 5.000000e-01 : f32
    %348 = vector.broadcast %cst_119 : f32 to vector<8x32xf32>
    %349 = arith.mulf %348, %347 : vector<8x32xf32>
    %350 = arith.mulf %343, %301 : vector<8x32xf32>
    %351 = arith.mulf %338, %344 : vector<8x32xf32>
    %352 = arith.addf %350, %351 : vector<8x32xf32>
    %353 = math.tanh %352 : vector<8x32xf32>
    %354 = arith.mulf %349, %353 : vector<8x32xf32>
    %355 = tpu.concatenate %332, %354 in 1 : vector<8x32xf32>, vector<8x32xf32> -> vector<8x64xf32>
    %356 = arith.truncf %355 : vector<8x64xf32> to vector<8x64xbf16>
    %c0_120 = arith.constant 0 : index
    %c0_121 = arith.constant 0 : index
    %357 = vector.load %arg2[%c0_120, %c0_121] : memref<64x256xbf16, #tpu.memory_space<vmem>>, vector<64x256xbf16>
    %cst_122 = arith.constant dense<0.000000e+00> : vector<8x256xf32>
    %358 = tpu.matmul %356, %357, %cst_122 {dimension_numbers = #tpu.dot_dimension_numbers<[1], [0], [0], [1], [0, 0, 1, 1], [], []>} : vector<8x64xbf16>, vector<64x256xbf16>, vector<8x256xf32> -> vector<8x256xf32>
    %c56 = arith.constant 56 : index
    %c0_123 = arith.constant 0 : index
    %359 = vector.load %arg7[%c56, %c0_123] : memref<72x256xf32, #tpu.memory_space<vmem>>, vector<8x256xf32>
    %360 = arith.addf %358, %359 : vector<8x256xf32>
    %361 = math.tanh %360 : vector<8x256xf32>
    %362 = vector.extract_strided_slice %361 {offsets = [0, 0], sizes = [8, 128], strides = [1, 1]} : vector<8x256xf32> to vector<8x128xf32>
    %363 = vector.extract_strided_slice %362 {offsets = [0, 0], sizes = [8, 32], strides = [1, 1]} : vector<8x128xf32> to vector<8x32xf32>
    %cst_124 = arith.constant 1.000000e+00 : f32
    %364 = vector.broadcast %cst_124 : f32 to vector<8x32xf32>
    %365 = arith.addf %363, %364 : vector<8x32xf32>
    %cst_125 = arith.constant 5.000000e-01 : f32
    %366 = vector.broadcast %cst_125 : f32 to vector<8x32xf32>
    %367 = arith.mulf %366, %365 : vector<8x32xf32>
    %368 = vector.extract_strided_slice %362 {offsets = [0, 32], sizes = [8, 32], strides = [1, 1]} : vector<8x128xf32> to vector<8x32xf32>
    %cst_126 = arith.constant 1.000000e+00 : f32
    %369 = vector.broadcast %cst_126 : f32 to vector<8x32xf32>
    %370 = arith.addf %368, %369 : vector<8x32xf32>
    %cst_127 = arith.constant 5.000000e-01 : f32
    %371 = vector.broadcast %cst_127 : f32 to vector<8x32xf32>
    %372 = arith.mulf %371, %370 : vector<8x32xf32>
    %373 = vector.extract_strided_slice %362 {offsets = [0, 64], sizes = [8, 32], strides = [1, 1]} : vector<8x128xf32> to vector<8x32xf32>
    %374 = vector.extract_strided_slice %362 {offsets = [0, 96], sizes = [8, 32], strides = [1, 1]} : vector<8x128xf32> to vector<8x32xf32>
    %cst_128 = arith.constant 1.000000e+00 : f32
    %375 = vector.broadcast %cst_128 : f32 to vector<8x32xf32>
    %376 = arith.addf %374, %375 : vector<8x32xf32>
    %cst_129 = arith.constant 5.000000e-01 : f32
    %377 = vector.broadcast %cst_129 : f32 to vector<8x32xf32>
    %378 = arith.mulf %377, %376 : vector<8x32xf32>
    %379 = arith.mulf %372, %330 : vector<8x32xf32>
    %380 = arith.mulf %367, %373 : vector<8x32xf32>
    %381 = arith.addf %379, %380 : vector<8x32xf32>
    %382 = math.tanh %381 : vector<8x32xf32>
    %383 = arith.mulf %378, %382 : vector<8x32xf32>
    %384 = vector.extract_strided_slice %361 {offsets = [0, 128], sizes = [8, 128], strides = [1, 1]} : vector<8x256xf32> to vector<8x128xf32>
    %385 = vector.extract_strided_slice %384 {offsets = [0, 0], sizes = [8, 32], strides = [1, 1]} : vector<8x128xf32> to vector<8x32xf32>
    %cst_130 = arith.constant 1.000000e+00 : f32
    %386 = vector.broadcast %cst_130 : f32 to vector<8x32xf32>
    %387 = arith.addf %385, %386 : vector<8x32xf32>
    %cst_131 = arith.constant 5.000000e-01 : f32
    %388 = vector.broadcast %cst_131 : f32 to vector<8x32xf32>
    %389 = arith.mulf %388, %387 : vector<8x32xf32>
    %390 = vector.extract_strided_slice %384 {offsets = [0, 32], sizes = [8, 32], strides = [1, 1]} : vector<8x128xf32> to vector<8x32xf32>
    %cst_132 = arith.constant 1.000000e+00 : f32
    %391 = vector.broadcast %cst_132 : f32 to vector<8x32xf32>
    %392 = arith.addf %390, %391 : vector<8x32xf32>
    %cst_133 = arith.constant 5.000000e-01 : f32
    %393 = vector.broadcast %cst_133 : f32 to vector<8x32xf32>
    %394 = arith.mulf %393, %392 : vector<8x32xf32>
    %395 = vector.extract_strided_slice %384 {offsets = [0, 64], sizes = [8, 32], strides = [1, 1]} : vector<8x128xf32> to vector<8x32xf32>
    %396 = vector.extract_strided_slice %384 {offsets = [0, 96], sizes = [8, 32], strides = [1, 1]} : vector<8x128xf32> to vector<8x32xf32>
    %cst_134 = arith.constant 1.000000e+00 : f32
    %397 = vector.broadcast %cst_134 : f32 to vector<8x32xf32>
    %398 = arith.addf %396, %397 : vector<8x32xf32>
    %cst_135 = arith.constant 5.000000e-01 : f32
    %399 = vector.broadcast %cst_135 : f32 to vector<8x32xf32>
    %400 = arith.mulf %399, %398 : vector<8x32xf32>
    %401 = arith.mulf %394, %352 : vector<8x32xf32>
    %402 = arith.mulf %389, %395 : vector<8x32xf32>
    %403 = arith.addf %401, %402 : vector<8x32xf32>
    %404 = math.tanh %403 : vector<8x32xf32>
    %405 = arith.mulf %400, %404 : vector<8x32xf32>
    %406 = tpu.concatenate %383, %405 in 1 : vector<8x32xf32>, vector<8x32xf32> -> vector<8x64xf32>
    %407 = arith.truncf %406 : vector<8x64xf32> to vector<8x64xbf16>
    %c0_136 = arith.constant 0 : index
    %c0_137 = arith.constant 0 : index
    %408 = vector.load %arg2[%c0_136, %c0_137] : memref<64x256xbf16, #tpu.memory_space<vmem>>, vector<64x256xbf16>
    %cst_138 = arith.constant dense<0.000000e+00> : vector<8x256xf32>
    %409 = tpu.matmul %407, %408, %cst_138 {dimension_numbers = #tpu.dot_dimension_numbers<[1], [0], [0], [1], [0, 0, 1, 1], [], []>} : vector<8x64xbf16>, vector<64x256xbf16>, vector<8x256xf32> -> vector<8x256xf32>
    %c64 = arith.constant 64 : index
    %c0_139 = arith.constant 0 : index
    %410 = vector.load %arg7[%c64, %c0_139] : memref<72x256xf32, #tpu.memory_space<vmem>>, vector<8x256xf32>
    %411 = arith.addf %409, %410 : vector<8x256xf32>
    %412 = math.tanh %411 : vector<8x256xf32>
    %413 = vector.extract_strided_slice %412 {offsets = [0, 128], sizes = [8, 128], strides = [1, 1]} : vector<8x256xf32> to vector<8x128xf32>
    %414 = vector.extract_strided_slice %413 {offsets = [0, 0], sizes = [8, 32], strides = [1, 1]} : vector<8x128xf32> to vector<8x32xf32>
    %cst_140 = arith.constant 1.000000e+00 : f32
    %415 = vector.broadcast %cst_140 : f32 to vector<8x32xf32>
    %416 = arith.addf %414, %415 : vector<8x32xf32>
    %cst_141 = arith.constant 5.000000e-01 : f32
    %417 = vector.broadcast %cst_141 : f32 to vector<8x32xf32>
    %418 = arith.mulf %417, %416 : vector<8x32xf32>
    %419 = vector.extract_strided_slice %413 {offsets = [0, 32], sizes = [8, 32], strides = [1, 1]} : vector<8x128xf32> to vector<8x32xf32>
    %cst_142 = arith.constant 1.000000e+00 : f32
    %420 = vector.broadcast %cst_142 : f32 to vector<8x32xf32>
    %421 = arith.addf %419, %420 : vector<8x32xf32>
    %cst_143 = arith.constant 5.000000e-01 : f32
    %422 = vector.broadcast %cst_143 : f32 to vector<8x32xf32>
    %423 = arith.mulf %422, %421 : vector<8x32xf32>
    %424 = vector.extract_strided_slice %413 {offsets = [0, 64], sizes = [8, 32], strides = [1, 1]} : vector<8x128xf32> to vector<8x32xf32>
    %425 = vector.extract_strided_slice %413 {offsets = [0, 96], sizes = [8, 32], strides = [1, 1]} : vector<8x128xf32> to vector<8x32xf32>
    %cst_144 = arith.constant 1.000000e+00 : f32
    %426 = vector.broadcast %cst_144 : f32 to vector<8x32xf32>
    %427 = arith.addf %425, %426 : vector<8x32xf32>
    %cst_145 = arith.constant 5.000000e-01 : f32
    %428 = vector.broadcast %cst_145 : f32 to vector<8x32xf32>
    %429 = arith.mulf %428, %427 : vector<8x32xf32>
    %430 = arith.mulf %423, %403 : vector<8x32xf32>
    %431 = arith.mulf %418, %424 : vector<8x32xf32>
    %432 = arith.addf %430, %431 : vector<8x32xf32>
    %433 = math.tanh %432 : vector<8x32xf32>
    %434 = arith.mulf %429, %433 : vector<8x32xf32>
    %435 = tpu.concatenate %383, %381, %434, %432 in 1 : vector<8x32xf32>, vector<8x32xf32>, vector<8x32xf32>, vector<8x32xf32> -> vector<8x128xf32>
    %436 = math.tanh %435 : vector<8x128xf32>
    %c0_146 = arith.constant 0 : index
    %c0_147 = arith.constant 0 : index
    %437 = vector.load %arg4[%c0_146, %c0_147] : memref<128x128xf32, #tpu.memory_space<vmem>>, vector<128x128xf32>
    %cst_148 = arith.constant dense<0.000000e+00> : vector<8x128xf32>
    %438 = tpu.matmul %436, %437, %cst_148 {dimension_numbers = #tpu.dot_dimension_numbers<[1], [0], [0], [1], [0, 0, 1, 1], [], []>} : vector<8x128xf32>, vector<128x128xf32>, vector<8x128xf32> -> vector<8x128xf32>
    %c0_149 = arith.constant 0 : index
    %c0_150 = arith.constant 0 : index
    %439 = vector.load %arg5[%c0_149, %c0_150] : memref<1x128xf32, #tpu.memory_space<vmem>>, vector<1x128xf32>
    %440 = vector.broadcast %439 : vector<1x128xf32> to vector<8x128xf32>
    %441 = arith.addf %438, %440 : vector<8x128xf32>
    %c0_151 = arith.constant 0 : index
    %c0_152 = arith.constant 0 : index
    %442 = vector.load %arg6[%c0_151, %c0_152] : memref<8x128xf32, #tpu.memory_space<vmem>>, vector<8x128xf32>
    tpu.vector_store %arg6[%c0_151, %c0_152], %441 {strides = array<i32>} : memref<8x128xf32, #tpu.memory_space<vmem>>, vector<8x128xf32>,
    return
  }
}

</mosaic_0001>

<bundles_post_ra>
// kernel: tpu_custom_call.1
= control target key start
LH: loop header
LB: loop body
LE: loop exit
PB: predicated region body
PF: predicated region fallthrough
CT: control target
= control target key end

     0   :  { %11 = vsyncpa [#allocation4], 0  ;;  %s1953_s0 = inlined_call_operand.vmem [shape: s32[64,1], index: 0, kind: input, shape index: {}]   ;;  %s1954_s1 = inlined_call_operand.hbm [shape: f32[20,128], index: 1, kind: input, shape index: {}]   ;;  %s1955_s2 = inlined_call_operand.vmem [shape: bf16[64,256], index: 2, kind: input, shape index: {}]   ;;  %s1956_s3 = inlined_call_operand.vmem [shape: f32[1,256], index: 3, kind: input, shape index: {}]   ;;  %s1957_s4 = inlined_call_operand.hbm [shape: f32[128,128], index: 4, kind: input, shape index: {}]   ;;  %s1958_s5 = inlined_call_operand.vmem [shape: f32[1,128], index: 5, kind: input, shape index: {}]   ;;  %s1959_s6 = inlined_call_operand.hbm [shape: f32[8,128], index: 6, kind: output, shape index: {}]  }
   0x1   :  { %12 = vsyncpa [#allocation7], 0 }
   0x2   :  { %13 = vsyncpa [#allocation5], 0  ;;  %s1573_s21 = smov [#allocation3]   ;;  %s1501_s25 = scalar_lea.hbm %s1954_s1, 384 }
   0x3   :  { %s21_s22 = sshll.u32 %s1573_s21, 4  ;;  %p1502_p0 = scmp.ne.s32.totalorder %s1954_s1, %s1501_s25  ;;  %s22_s22 = int_to_ptr.vmem [resolvable:$true] %s21_s22 }
   0x4   :  { %p1505_p1 = scmp.lt.u32.totalorder %s1501_s25, %s1954_s1 }
   0x6   :  { %p1507_p2 = pnand %p1505_p1, %p1502_p0 }
   0x8   :  { %1510 = shalt.err (!%p1507_p2)
}
   0x9   :  { %s1511_s30 = scalar_lea.vmem %s22_s22, 384  ;;  %p1516_p4 = scmp.lt.s32.totalorder %s22_s22, %s22_s22 }
   0xa   :  { %p1512_p3 = scmp.ne.s32.totalorder %s22_s22, %s1511_s30  ;;  %p1517_p5 = scmp.lt.s32.totalorder %s1511_s30, %s1511_s30 }
   0xc   :  { %p1518_p6 = por %p1517_p5, %p1516_p4 }
   0xe   :  { %p1519_p7 = pnand %p1518_p6, %p1512_p3 }
  0x10   :  { %1522 = shalt.err (!%p1519_p7)
}
  0x11   :  { %s1574_s7 = smov 128   ;;  %s1575_s8 = smov 8  }
  0x12   :  { %27 = dma.hbm_to_vmem [thread:$0]  %s1954_s1, 384, %s22_s22, [#allocation4], %s1574_s7, %s1574_s7, %s1575_s8  }
  0x13   :  { %s1576_s11 = smov [#allocation6]   ;;  %s1523_s15 = scalar_lea.hbm %s1957_s4, 2048 }
  0x14   :  { %s37_s12 = sshll.u32 %s1576_s11, 4  ;;  %p1524_p8 = scmp.ne.s32.totalorder %s1957_s4, %s1523_s15  ;;  %s38_s12 = int_to_ptr.vmem [resolvable:$true] %s37_s12 }
  0x15   :  { %p1527_p9 = scmp.lt.u32.totalorder %s1523_s15, %s1957_s4 }
  0x17   :  { %p1529_p10 = pnand %p1527_p9, %p1524_p8 }
  0x19   :  { %1532 = shalt.err (!%p1529_p10)
}
  0x1a   :  { %s1533_s20 = scalar_lea.vmem %s38_s12, 2048  ;;  %p1538_p12 = scmp.lt.s32.totalorder %s38_s12, %s38_s12 }
  0x1b   :  { %p1534_p11 = scmp.ne.s32.totalorder %s38_s12, %s1533_s20  ;;  %p1539_p13 = scmp.lt.s32.totalorder %s1533_s20, %s1533_s20 }
  0x1d   :  { %p1540_p0 = por %p1539_p13, %p1538_p12 }
  0x1f   :  { %p1541_p1 = pnand %p1540_p0, %p1534_p11 }
  0x21   :  { %1544 = shalt.err (!%p1541_p1)
}
  0x22   :  { %43 = dma.hbm_to_vmem [thread:$0]  %s1957_s4, 2048, %s38_s12, [#allocation7], %s1574_s7, %s1574_s7, %s1575_s8  }
  0x23   :  { %1567 = dma.done.wait [#allocation4], 384  }
  0x24   :  { %1568 = vsyncadd [#allocation4], 4294966912 }
  0x25   :  { %1569 = dma.done.wait [#allocation7], 2048  }
  0x26   :  { %1570 = vsyncadd [#allocation7], 4294965248  ;;  %v1577_v0 = vmov 0   ;;  %v55_v1 = vld [vmem:[%s1953_s0 + $0x10] sm:$0xff]  ;;  %v53_v2 = vld [vmem:[%s1953_s0] sm:$0xff]  ;;  %vm169_vm0 = vcmask 1043456   ;;  %v61_v21 = vlaneseq }
  0x27   :  { %1422 = vset.pattern.permute.xlu1 %v1577_v0  ;;  %1421 = vset.pattern.permute.xlu0 %v1577_v0  ;;  %v56_v3 = vld [vmem:[%s1953_s0 + $0x18] sm:$0xff]  ;;  %v54_v4 = vld [vmem:[%s1953_s0 + $0x8] sm:$0xff]  ;;  %v141_v5 = vld [vmem:[#allocation3] sm:$0xff]  ;;  %vm144_vm1 = vcmask 162816   ;;  %v1578_v25 = vmov 0.0   ;;  %v1579_v40 = vmov 0.0|0.0  }
  0x28   :  { %444 = vmatprep.mubr.bf16.mxu0 %v1577_v0  ;;  %70 = vperm.xlu1 %1422, %v55_v1   ;;  %v142_v6 = vld [vmem:[#allocation3 + $0x8] sm:$0xff]  ;;  %v143_v7 = vld [vmem:[#allocation3 + $0x10] sm:$0xf]  ;;  %v57_v9 = vld [vmem:[%s1953_s0 + $0x20] sm:$0xff]  ;;  %v62_v22 = vand.u32 127, %v61_v21  ;;  %v114_v41 = vshrl.u32 %v61_v21, 7 }
  0x29   :  { %64 = vperm.xlu0 %1421, %v53_v2   ;;  %v58_v8 = vld [vmem:[%s1953_s0 + $0x28] sm:$0xff]  ;;  %v1381_v10 = vpack.c.bf16 %v142_v6, %v141_v5  ;;  %v1680_v13 = vld [vmem:[%s1955_s2 + $0x14] ss:$8 sps:$4 sm:$0xff]   ;;  %v1691_v16 = vld [vmem:[%s1955_s2 + $0x10] ss:$8 sps:$4 sm:$0xff]   ;;  %s1581_s27 = smov 32  }
  0x2a   :  { %v1668_v11 = vld [vmem:[%s1955_s2 + $0x4] ss:$8 sps:$4 sm:$0xff]   ;;  %v1673_v12 = vld [vmem:[%s1955_s2] ss:$8 sps:$4 sm:$0xff]   ;;  %v60_v14 = vld [vmem:[%s1953_s0 + $0x38] sm:$0xff]  ;;  %v115_v42 = vsub.s32 0, %v114_v41 }
  0x2b   :  { %1382 = vmatprep.subr.bf16.mxu1 %v1381_v10  ;;  %412 = vmatprep.subr.bf16.mxu0 %v1668_v11  ;;  %v59_v15 = vld [vmem:[%s1953_s0 + $0x30] sm:$0xff]  ;;  %v1699_v17 = vld [vmem:[%s1955_s2 + $0x24] ss:$8 sps:$4 sm:$0xff]   ;;  %v1704_v18 = vld [vmem:[%s1955_s2 + $0x20] ss:$8 sps:$4 sm:$0xff]   ;;  %vm404_vm10 = vcmask 261120  }
  0x2c   :  { %73 = vperm.xlu1 %1422, %v56_v3   ;;  %1384 = vmatpush3.bf16.msra.mxu1 %v1381_v10  ;;  %v1710_v19 = vld [vmem:[%s1955_s2 + $0x34] ss:$8 sps:$4 sm:$0xff]   ;;  %v1716_v20 = vld [vmem:[%s1955_s2 + $0x30] ss:$8 sps:$4 sm:$0xff]   ;;  %v111_v43 = vld [vmem:[%s1956_s3] sm:$0x3] }
  0x2d   :  { %67 = vperm.xlu0 %1421, %v54_v4   ;;  %1332 = vmatprep.subr.msk.mxu1 %vm169_vm0, %v143_v7  ;;  %v116_v44 = vrot.slane %v111_v43, %v115_v42  ;;  %s1580_s3 = smov 64   ;;  %vm336_vm11 = vcmask 523264   ;;  %vm1582_vm12 = vmmov 0   ;;  %s1583_s28 = smov 96   ;;  %vm1153_vm13 = vcmask 785408  }
  0x2e   :  { %413 = vmatpush1.bf16.msra.mxu0 %v1673_v12  ;;  %s1584_s7 = smov [#allocation8]  }
  0x2f   :  { %414 = vmatprep.subr.bf16.mxu0 %v1680_v13  ;;  %s1256_s8 = sshll.u32 %s1584_s7, 4  ;;  %s1257_s8 = int_to_ptr.vmem [resolvable:$true] %s1256_s8 }
  0x30   :  { %79 = vperm.xlu1 %1422, %v58_v8   ;;  %1333 = vmatpush3.msk.msra.mxu1 %vm169_vm0, %v143_v7  ;;  %s1545_s9 = scalar_lea.vmem %s1257_s8, 128  ;;  %p1550_p3 = scmp.lt.s32.totalorder %s1257_s8, %s1257_s8 }
  0x31   :  { %76 = vperm.xlu0 %1421, %v57_v9   ;;  %340 = vmatprep.subr.bf16.mxu1 %v1668_v11  ;;  %p1546_p2 = scmp.ne.s32.totalorder %s1257_s8, %s1545_s9  ;;  %p1551_p4 = scmp.lt.s32.totalorder %s1545_s9, %s1545_s9 }
  0x32   :  { %415 = vmatpush1.bf16.msra.mxu0 %v1691_v16 }
  0x33   :  { %416 = vmatprep.subr.bf16.mxu0 %v1699_v17  ;;  %p1552_p5 = por %p1551_p4, %p1550_p3 }
  0x34   :  { %85 = vperm.xlu1 %1422, %v60_v14  }
  0x35   :  { %82 = vperm.xlu0 %1421, %v59_v15   ;;  %p1553_p6 = pnand %p1552_p5, %p1546_p2 }
  0x36   :  { %417 = vmatpush1.bf16.msra.mxu0 %v1704_v18 }
  0x37   :  { %418 = vmatprep.subr.bf16.mxu0 %v1710_v19 }
  0x3a   :  { %419 = vmatpush1.bf16.msra.mxu0 %v1716_v20 }
  0x3b   :  { %604 = vmatprep.subr.bf16.mxu0 %v1668_v11 }
  0xa7   :  { %v71_v23 = vpop.permute.xlu1 %70 }
  0xa8   :  { %v65_v24 = vpop.permute.xlu0 %64  ;;  %vm89_vm3 = vcmp.eq.s32.totalorder %v71_v23, %v62_v22 }
  0xa9   :  { %vm87_vm2 = vcmp.eq.s32.totalorder %v65_v24, %v62_v22  ;;  %v1268_v29 = vsel %vm89_vm3, 1.0, %v1578_v25 }
  0xaa   :  { %v1266_v26 = vsel %vm87_vm2, 1.0, %v1578_v25 }
  0xab   :  { %1334 = vmatprep.mubr.msk.f32.mxu1 %vm144_vm1, %v1266_v26  ;;  %v74_v27 = vpop.permute.xlu1 %73  ;;  %v119_v26 = vsub.s32 1, %v114_v41 }
  0xac   :  { %v68_v28 = vpop.permute.xlu0 %67  ;;  %vm90_vm5 = vcmp.eq.s32.totalorder %v74_v27, %v62_v22 }
  0xad   :  { %vm88_vm4 = vcmp.eq.s32.totalorder %v68_v28, %v62_v22  ;;  %v1269_v33 = vsel %vm90_vm5, 1.0, %v1578_v25  ;;  %v1786_v27 = vrot.slane %v111_v43, %v119_v26 }
  0xae   :  { %v1267_v30 = vsel %vm88_vm4, 1.0, %v1578_v25 }
  0xaf   :  { %1335 = vmatmul.mubr.msk.f32.vlgmr.msra.gmra.mrb[0].mxu1 %vm144_vm1, %v1267_v30  ;;  %v80_v31 = vpop.permute.xlu1 %79 }
  0xb0   :  { %341 = vmatpush1.bf16.msra.mxu1 %v1673_v12  ;;  %1337 = vmatprep.mubr.msk.f32.mxu1 %vm144_vm1, %v1268_v29  ;;  %v77_v32 = vpop.permute.xlu0 %76  ;;  %vm92_vm7 = vcmp.eq.s32.totalorder %v80_v31, %v62_v22 }
  0xb1   :  { %vm91_vm6 = vcmp.eq.s32.totalorder %v77_v32, %v62_v22  ;;  %342 = vmatprep.subr.bf16.mxu1 %v1680_v13  ;;  %v1271_v37 = vsel %vm92_vm7, 1.0, %v1578_v25 }
  0xb2   :  { %v1270_v34 = vsel %vm91_vm6, 1.0, %v1578_v25 }
  0xb3   :  { %1338 = vmatmul.mubr.msk.f32.gmra.mrb[2].mxu1 %vm144_vm1, %v1269_v33  ;;  %v86_v35 = vpop.permute.xlu1 %85 }
  0xb4   :  { %343 = vmatpush1.bf16.msra.mxu1 %v1691_v16  ;;  %1340 = vmatprep.mubr.msk.f32.mxu1 %vm144_vm1, %v1270_v34  ;;  %v83_v36 = vpop.permute.xlu0 %82  ;;  %vm94_vm9 = vcmp.eq.s32.totalorder %v86_v35, %v62_v22 }
  0xb5   :  { %vm93_vm8 = vcmp.eq.s32.totalorder %v83_v36, %v62_v22  ;;  %344 = vmatprep.subr.bf16.mxu1 %v1699_v17  ;;  %v1273_v39 = vsel %vm94_vm9, 1.0, %v1578_v25 }
  0xb6   :  { %v1272_v38 = vsel %vm93_vm8, 1.0, %v1578_v25 }
  0xb7   :  { %1341 = vmatmul.mubr.msk.f32.gmra.mrb[4].mxu1 %vm144_vm1, %v1271_v37 }
  0xb8   :  { %345 = vmatpush1.bf16.msra.mxu1 %v1704_v18  ;;  %1343 = vmatprep.mubr.msk.f32.mxu1 %vm144_vm1, %v1272_v38 }
  0xb9   :  { %346 = vmatprep.subr.bf16.mxu1 %v1710_v19 }
  0xbb   :  { %1344 = vmatmul.mubr.msk.f32.gmra.mrb[6].mxu1 %vm144_vm1, %v1273_v39 }
  0xbc   :  { %347 = vmatpush1.bf16.msra.mxu1 %v1716_v20  ;;  %372 = vmatprep.mubr.bf16.mxu1 %v1577_v0 }
  0xbd   :  { %508 = vmatprep.subr.bf16.mxu1 %v1668_v11 }
  0xbf   :  { %373 = vmatmul.mubr.bf16.vlgmr.msra.gmra.mrb[8].mxu1 %v1579_v40 }
  0xc0   :  { %509 = vmatpush1.bf16.msra.mxu1 %v1673_v12  ;;  %540 = vmatprep.mubr.bf16.mxu1 %v1577_v0 }
  0xc1   :  { %510 = vmatprep.subr.bf16.mxu1 %v1680_v13 }
  0xc4   :  { %511 = vmatpush1.bf16.msra.mxu1 %v1691_v16 }
  0xc5   :  { %512 = vmatprep.subr.bf16.mxu1 %v1699_v17 }
  0xc8   :  { %513 = vmatpush1.bf16.msra.mxu1 %v1704_v18 }
  0xc9   :  { %514 = vmatprep.subr.bf16.mxu1 %v1710_v19 }
  0xcc   :  { %515 = vmatpush1.bf16.msra.mxu1 %v1716_v20 }
  0xcd   :  { %700 = vmatprep.subr.bf16.mxu1 %v1668_v11 }
 0x182   :  { %v1336_v45 = vpop.f32.mrb[0].mxu1 }
 0x183   :  { %v245_v46 = vadd.f32 %v1336_v45, %v116_v44  ;;  %v239_v47 = vpop.f32.mrb[1].mxu1 }
 0x184   :  { %v240_v60 = vadd.f32 %v239_v47, %v116_v44 }
 0x186   :  { %v1339_v48 = vpop.f32.mrb[2].mxu1 }
 0x187   :  { %v1759_v49 = vadd.f32 %v1339_v48, %v116_v44  ;;  %v249_v50 = vpop.f32.mrb[3].mxu1 }
 0x188   :  { %v1761_v51 = vadd.f32 %v249_v50, %v116_v44 }
 0x18a   :  { %v1342_v52 = vpop.f32.mrb[4].mxu1 }
 0x18b   :  { %v1763_v53 = vadd.f32 %v1342_v52, %v116_v44  ;;  %v259_v54 = vpop.f32.mrb[5].mxu1 }
 0x18c   :  { %v1765_v55 = vadd.f32 %v259_v54, %v116_v44 }
 0x18e   :  { %v1345_v56 = vpop.f32.mrb[6].mxu1 }
 0x18f   :  { %v1767_v57 = vadd.f32 %v1345_v56, %v116_v44  ;;  %v269_v58 = vpop.f32.mrb[7].mxu1 }
 0x190   :  { %v1769_v59 = vadd.f32 %v269_v58, %v116_v44 }
 0x192   :  { %v374_v61 = vpop.f32.mrb[8].mxu1 }
 0x193   :  { %v375_v62 = vadd.f32 %v374_v61, %v240_v60  ;;  %v376_v63 = vpop.f32.mrb[9].mxu1 }
 0x194   :  { %v377_v1 = vpop.f32.mrb[10].mxu1 }
 0x195   :  { %1435 = vtanh.f32 %v375_v62  ;;  %v378_v2 = vpop.f32.mrb[11].mxu1 }
 0x19f   :  { %v1436_v3 = vpop.eup %1435 }
 0x1a0   :  { %385 = vrot.lane.b32.xlu0 %v1436_v3, %s1580_s3  ;;  %v381_v4 = vadd.f32 1.0, %v1436_v3 }
 0x1a2   :  { %v382_v5 = vmul.f32 0.5, %v381_v4 }
 0x1a4   :  { %v383_v8 = vmul.f32 0.0, %v382_v5 }
 0x212   :  { %v386_v6 = vpop.permute.xlu0 %385 }
 0x213   :  { %v388_v7 = vmul.f32 %v386_v6, %v382_v5 }
 0x215   :  { %390 = vrot.lane.b32.xlu1 %v388_v7, %s1581_s27 }
 0x287   :  { %v391_v9 = vpop.permute.xlu1 %390 }
 0x288   :  { %v393_v10 = vadd.f32 %v391_v9, %v383_v8 }
 0x28a   :  { %1437 = vtanh.f32 %v393_v10 }
 0x294   :  { %v1438_v14 = vpop.eup %1437 }
 0x295   :  { %396 = vrot.lane.b32.xlu0 %v1438_v14, %s1580_s3 }
 0x307   :  { %v397_v15 = vpop.permute.xlu0 %396 }
 0x308   :  { %v399_v21 = vmul.f32 %v397_v15, %v382_v5 }
 0x30a   :  { %401 = vrot.lane.b32.xlu1 %v399_v21, %s1581_s27 }
 0x37c   :  { %v402_v22 = vpop.permute.xlu1 %401 }
 0x37d   :  { %v405_v23 = vsel %vm404_vm10, %v402_v22, 0.0 }
 0x37e   :  { %v406_v24 = vpack.c.bf16 %v405_v23, %v405_v23 }
 0x380   :  { %1291 = vmatmul.mubr.msk.bf16.vlgmr.msra.gmra.mrb[0].mxu0 %vm336_vm11, %v406_v24 }
 0x381   :  { %605 = vmatpush1.bf16.msra.mxu0 %v1673_v12  ;;  %636 = vmatprep.mubr.bf16.mxu0 %v1577_v0 }
 0x382   :  { %606 = vmatprep.subr.bf16.mxu0 %v1680_v13 }
 0x385   :  { %607 = vmatpush1.bf16.msra.mxu0 %v1691_v16 }
 0x386   :  { %608 = vmatprep.subr.bf16.mxu0 %v1699_v17 }
 0x389   :  { %609 = vmatpush1.bf16.msra.mxu0 %v1704_v18 }
 0x38a   :  { %610 = vmatprep.subr.bf16.mxu0 %v1710_v19 }
 0x38d   :  { %611 = vmatpush1.bf16.msra.mxu0 %v1716_v20 }
 0x38e   :  { %796 = vmatprep.subr.bf16.mxu0 %v1668_v11 }
 0x453   :  { %v446_v28 = vpop.f32.mrb[0].mxu0 }
 0x454   :  { %v447_v29 = vadd.f32 %v446_v28, %v245_v46  ;;  %v448_v30 = vpop.f32.mrb[1].mxu0 }
 0x455   :  { %v449_v31 = vadd.f32 %v448_v30, %v1786_v27  ;;  %v450_v32 = vpop.f32.mrb[2].mxu0 }
 0x456   :  { %1439 = vtanh.f32 %v447_v29  ;;  %v451_v33 = vpop.f32.mrb[3].mxu0 }
 0x457   :  { %1441 = vtanh.f32 %v449_v31 }
 0x460   :  { %v1440_v34 = vpop.eup %1439 }
 0x461   :  { %v1442_v35 = vpop.eup %1441  ;;  %459 = vrot.lane.b32.xlu0 %v1440_v34, %s1580_s3  ;;  %v455_v36 = vadd.f32 1.0, %v1440_v34 }
 0x462   :  { %478 = vrot.lane.b32.xlu1 %v1442_v35, %s1580_s3  ;;  %v474_v37 = vadd.f32 1.0, %v1442_v35 }
 0x463   :  { %v456_v38 = vmul.f32 0.5, %v455_v36 }
 0x464   :  { %v475_v41 = vmul.f32 0.5, %v474_v37 }
 0x465   :  { %v457_v45 = vmul.f32 %v456_v38, %v393_v10 }
 0x466   :  { %v476_v47 = vmul.f32 0.0, %v475_v41 }
 0x4d3   :  { %v460_v39 = vpop.permute.xlu0 %459 }
 0x4d4   :  { %v462_v42 = vmul.f32 %v460_v39, %v456_v38  ;;  %v479_v43 = vpop.permute.xlu1 %478 }
 0x4d5   :  { %v481_v44 = vmul.f32 %v479_v43, %v475_v41 }
 0x4d6   :  { %464 = vrot.lane.b32.xlu0 %v462_v42, %s1581_s27 }
 0x4d7   :  { %483 = vrot.lane.b32.xlu1 %v481_v44, %s1581_s27 }
 0x548   :  { %v465_v46 = vpop.permute.xlu0 %464 }
 0x549   :  { %v467_v48 = vadd.f32 %v465_v46, %v457_v45  ;;  %v484_v50 = vpop.permute.xlu1 %483 }
 0x54a   :  { %v486_v52 = vadd.f32 %v484_v50, %v476_v47 }
 0x54b   :  { %1443 = vtanh.f32 %v467_v48 }
 0x54c   :  { %1445 = vtanh.f32 %v486_v52 }
 0x555   :  { %v1444_v54 = vpop.eup %1443 }
 0x556   :  { %v1446_v56 = vpop.eup %1445  ;;  %470 = vrot.lane.b32.xlu0 %v1444_v54, %s1580_s3 }
 0x557   :  { %489 = vrot.lane.b32.xlu1 %v1446_v56, %s1580_s3 }
 0x5c8   :  { %v471_v58 = vpop.permute.xlu0 %470 }
 0x5c9   :  { %v473_v60 = vmul.f32 %v471_v58, %v456_v38  ;;  %v490_v61 = vpop.permute.xlu1 %489 }
 0x5ca   :  { %v492_v62 = vmul.f32 %v490_v61, %v475_v41 }
 0x5cb   :  { %494 = vrot.lane.b32.xlu0 %v473_v60, %s1581_s27 }
 0x5cc   :  { %498 = vrot.lane.b32.xlu1 %v492_v62, %s1580_s3 }
 0x63d   :  { %v495_v63 = vpop.permute.xlu0 %494 }
 0x63e   :  { %v499_v1 = vpop.permute.xlu1 %498 }
 0x63f   :  { %v501_v2 = vsel %vm404_vm10, %v495_v63, %v499_v1 }
 0x640   :  { %v502_v3 = vpack.c.bf16 %v501_v2, %v501_v2 }
 0x642   :  { %1292 = vmatmul.mubr.msk.bf16.vlgmr.msra.gmra.mrb[12].mxu1 %vm336_vm11, %v502_v3 }
 0x643   :  { %701 = vmatpush1.bf16.msra.mxu1 %v1673_v12  ;;  %732 = vmatprep.mubr.bf16.mxu1 %v1577_v0 }
 0x644   :  { %702 = vmatprep.subr.bf16.mxu1 %v1680_v13 }
 0x647   :  { %703 = vmatpush1.bf16.msra.mxu1 %v1691_v16 }
 0x648   :  { %704 = vmatprep.subr.bf16.mxu1 %v1699_v17 }
 0x64b   :  { %705 = vmatpush1.bf16.msra.mxu1 %v1704_v18 }
 0x64c   :  { %706 = vmatprep.subr.bf16.mxu1 %v1710_v19 }
 0x64f   :  { %707 = vmatpush1.bf16.msra.mxu1 %v1716_v20 }
 0x650   :  { %892 = vmatprep.subr.bf16.mxu1 %v1668_v11 }
 0x715   :  { %v542_v4 = vpop.f32.mrb[12].mxu1 }
 0x716   :  { %v543_v5 = vadd.f32 %v542_v4, %v1761_v51  ;;  %v544_v6 = vpop.f32.mrb[13].mxu1 }
 0x717   :  { %v545_v7 = vadd.f32 %v544_v6, %v1786_v27  ;;  %v546_v8 = vpop.f32.mrb[14].mxu1 }
 0x718   :  { %1447 = vtanh.f32 %v543_v5  ;;  %v547_v9 = vpop.f32.mrb[15].mxu1 }
 0x719   :  { %1449 = vtanh.f32 %v545_v7 }
 0x722   :  { %v1448_v10 = vpop.eup %1447 }
 0x723   :  { %v1450_v14 = vpop.eup %1449  ;;  %555 = vrot.lane.b32.xlu0 %v1448_v10, %s1580_s3  ;;  %v551_v15 = vadd.f32 1.0, %v1448_v10 }
 0x724   :  { %574 = vrot.lane.b32.xlu1 %v1450_v14, %s1580_s3  ;;  %v570_v21 = vadd.f32 1.0, %v1450_v14 }
 0x725   :  { %v552_v22 = vmul.f32 0.5, %v551_v15 }
 0x726   :  { %v571_v24 = vmul.f32 0.5, %v570_v21 }
 0x727   :  { %v553_v29 = vmul.f32 %v552_v22, %v467_v48 }
 0x728   :  { %v572_v31 = vmul.f32 %v571_v24, %v486_v52 }
 0x795   :  { %v556_v23 = vpop.permute.xlu0 %555 }
 0x796   :  { %v558_v26 = vmul.f32 %v556_v23, %v552_v22  ;;  %v575_v51 = vpop.permute.xlu1 %574 }
 0x797   :  { %v577_v28 = vmul.f32 %v575_v51, %v571_v24 }
 0x798   :  { %560 = vrot.lane.b32.xlu0 %v558_v26, %s1581_s27 }
 0x799   :  { %579 = vrot.lane.b32.xlu1 %v577_v28, %s1581_s27 }
 0x80a   :  { %v561_v30 = vpop.permute.xlu0 %560 }
 0x80b   :  { %v563_v32 = vadd.f32 %v561_v30, %v553_v29  ;;  %v580_v33 = vpop.permute.xlu1 %579 }
 0x80c   :  { %v582_v34 = vadd.f32 %v580_v33, %v572_v31 }
 0x80d   :  { %1451 = vtanh.f32 %v563_v32 }
 0x80e   :  { %1453 = vtanh.f32 %v582_v34 }
 0x817   :  { %v1452_v35 = vpop.eup %1451 }
 0x818   :  { %v1454_v36 = vpop.eup %1453  ;;  %566 = vrot.lane.b32.xlu0 %v1452_v35, %s1580_s3 }
 0x819   :  { %585 = vrot.lane.b32.xlu1 %v1454_v36, %s1580_s3 }
 0x88a   :  { %v567_v37 = vpop.permute.xlu0 %566 }
 0x88b   :  { %v569_v38 = vmul.f32 %v567_v37, %v552_v22  ;;  %v586_v39 = vpop.permute.xlu1 %585 }
 0x88c   :  { %v588_v41 = vmul.f32 %v586_v39, %v571_v24 }
 0x88d   :  { %590 = vrot.lane.b32.xlu0 %v569_v38, %s1581_s27 }
 0x88e   :  { %594 = vrot.lane.b32.xlu1 %v588_v41, %s1580_s3 }
 0x8ff   :  { %v591_v42 = vpop.permute.xlu0 %590 }
 0x900   :  { %v595_v43 = vpop.permute.xlu1 %594 }
 0x901   :  { %v597_v44 = vsel %vm404_vm10, %v591_v42, %v595_v43 }
 0x902   :  { %v598_v45 = vpack.c.bf16 %v597_v44, %v597_v44 }
 0x904   :  { %1293 = vmatmul.mubr.msk.bf16.vlgmr.msra.gmra.mrb[4].mxu0 %vm336_vm11, %v598_v45 }
 0x905   :  { %797 = vmatpush1.bf16.msra.mxu0 %v1673_v12  ;;  %828 = vmatprep.mubr.bf16.mxu0 %v1577_v0 }
 0x906   :  { %798 = vmatprep.subr.bf16.mxu0 %v1680_v13 }
 0x909   :  { %799 = vmatpush1.bf16.msra.mxu0 %v1691_v16 }
 0x90a   :  { %800 = vmatprep.subr.bf16.mxu0 %v1699_v17 }
 0x90d   :  { %801 = vmatpush1.bf16.msra.mxu0 %v1704_v18 }
 0x90e   :  { %802 = vmatprep.subr.bf16.mxu0 %v1710_v19 }
 0x911   :  { %803 = vmatpush1.bf16.msra.mxu0 %v1716_v20 }
 0x912   :  { %988 = vmatprep.subr.bf16.mxu0 %v1668_v11 }
 0x9d7   :  { %v638_v46 = vpop.f32.mrb[4].mxu0 }
 0x9d8   :  { %v639_v47 = vadd.f32 %v638_v46, %v1759_v49  ;;  %v640_v48 = vpop.f32.mrb[5].mxu0 }
 0x9d9   :  { %v641_v50 = vadd.f32 %v640_v48, %v1786_v27  ;;  %v642_v52 = vpop.f32.mrb[6].mxu0 }
 0x9da   :  { %1455 = vtanh.f32 %v639_v47  ;;  %v643_v54 = vpop.f32.mrb[7].mxu0 }
 0x9db   :  { %1457 = vtanh.f32 %v641_v50 }
 0x9e4   :  { %v1456_v56 = vpop.eup %1455 }
 0x9e5   :  { %v1458_v58 = vpop.eup %1457  ;;  %651 = vrot.lane.b32.xlu0 %v1456_v56, %s1580_s3  ;;  %v647_v60 = vadd.f32 1.0, %v1456_v56 }
 0x9e6   :  { %670 = vrot.lane.b32.xlu1 %v1458_v58, %s1580_s3  ;;  %v666_v61 = vadd.f32 1.0, %v1458_v58 }
 0x9e7   :  { %v648_v62 = vmul.f32 0.5, %v647_v60 }
 0x9e8   :  { %v667_v1 = vmul.f32 0.5, %v666_v61 }
 0x9e9   :  { %v649_v4 = vmul.f32 %v648_v62, %v563_v32 }
 0x9ea   :  { %v668_v6 = vmul.f32 %v667_v1, %v582_v34 }
 0xa57   :  { %v652_v63 = vpop.permute.xlu0 %651 }
 0xa58   :  { %v654_v2 = vmul.f32 %v652_v63, %v648_v62  ;;  %v671_v49 = vpop.permute.xlu1 %670 }
 0xa59   :  { %v673_v3 = vmul.f32 %v671_v49, %v667_v1 }
 0xa5a   :  { %656 = vrot.lane.b32.xlu0 %v654_v2, %s1581_s27 }
 0xa5b   :  { %675 = vrot.lane.b32.xlu1 %v673_v3, %s1581_s27 }
 0xacc   :  { %v657_v5 = vpop.permute.xlu0 %656 }
 0xacd   :  { %v659_v7 = vadd.f32 %v657_v5, %v649_v4  ;;  %v676_v8 = vpop.permute.xlu1 %675 }
 0xace   :  { %v678_v9 = vadd.f32 %v676_v8, %v668_v6 }
 0xacf   :  { %1459 = vtanh.f32 %v659_v7 }
 0xad0   :  { %1461 = vtanh.f32 %v678_v9 }
 0xad9   :  { %v1460_v10 = vpop.eup %1459 }
 0xada   :  { %v1462_v14 = vpop.eup %1461  ;;  %662 = vrot.lane.b32.xlu0 %v1460_v10, %s1580_s3 }
 0xadb   :  { %681 = vrot.lane.b32.xlu1 %v1462_v14, %s1580_s3 }
 0xb4c   :  { %v663_v15 = vpop.permute.xlu0 %662 }
 0xb4d   :  { %v665_v21 = vmul.f32 %v663_v15, %v648_v62  ;;  %v682_v22 = vpop.permute.xlu1 %681 }
 0xb4e   :  { %v684_v23 = vmul.f32 %v682_v22, %v667_v1 }
 0xb4f   :  { %686 = vrot.lane.b32.xlu0 %v665_v21, %s1581_s27 }
 0xb50   :  { %690 = vrot.lane.b32.xlu1 %v684_v23, %s1580_s3 }
 0xbc1   :  { %v687_v24 = vpop.permute.xlu0 %686 }
 0xbc2   :  { %v691_v26 = vpop.permute.xlu1 %690 }
 0xbc3   :  { %v693_v51 = vsel %vm404_vm10, %v687_v24, %v691_v26 }
 0xbc4   :  { %v694_v28 = vpack.c.bf16 %v693_v51, %v693_v51 }
 0xbc6   :  { %1294 = vmatmul.mubr.msk.bf16.vlgmr.msra.gmra.mrb[16].mxu1 %vm336_vm11, %v694_v28 }
 0xbc7   :  { %893 = vmatpush1.bf16.msra.mxu1 %v1673_v12  ;;  %924 = vmatprep.mubr.bf16.mxu1 %v1577_v0 }
 0xbc8   :  { %894 = vmatprep.subr.bf16.mxu1 %v1680_v13 }
 0xbcb   :  { %895 = vmatpush1.bf16.msra.mxu1 %v1691_v16 }
 0xbcc   :  { %896 = vmatprep.subr.bf16.mxu1 %v1699_v17 }
 0xbcf   :  { %897 = vmatpush1.bf16.msra.mxu1 %v1704_v18 }
 0xbd0   :  { %898 = vmatprep.subr.bf16.mxu1 %v1710_v19 }
 0xbd3   :  { %899 = vmatpush1.bf16.msra.mxu1 %v1716_v20 }
 0xbd4   :  { %1083 = vmatprep.subr.bf16.mxu1 %v1668_v11 }
 0xc99   :  { %v734_v29 = vpop.f32.mrb[16].mxu1 }
 0xc9a   :  { %v735_v30 = vadd.f32 %v734_v29, %v1765_v55  ;;  %v736_v31 = vpop.f32.mrb[17].mxu1 }
 0xc9b   :  { %v737_v32 = vadd.f32 %v736_v31, %v1786_v27  ;;  %v738_v33 = vpop.f32.mrb[18].mxu1 }
 0xc9c   :  { %1463 = vtanh.f32 %v735_v30  ;;  %v739_v34 = vpop.f32.mrb[19].mxu1 }
 0xc9d   :  { %1465 = vtanh.f32 %v737_v32 }
 0xca6   :  { %v1464_v35 = vpop.eup %1463 }
 0xca7   :  { %v1466_v36 = vpop.eup %1465  ;;  %747 = vrot.lane.b32.xlu0 %v1464_v35, %s1580_s3  ;;  %v743_v37 = vadd.f32 1.0, %v1464_v35 }
 0xca8   :  { %766 = vrot.lane.b32.xlu1 %v1466_v36, %s1580_s3  ;;  %v762_v38 = vadd.f32 1.0, %v1466_v36 }
 0xca9   :  { %v744_v39 = vmul.f32 0.5, %v743_v37 }
 0xcaa   :  { %v763_v41 = vmul.f32 0.5, %v762_v38 }
 0xcab   :  { %v745_v44 = vmul.f32 %v744_v39, %v659_v7 }
 0xcac   :  { %v764_v46 = vmul.f32 %v763_v41, %v678_v9 }
 0xd19   :  { %v748_v11 = vpop.permute.xlu0 %747 }
 0xd1a   :  { %v750_v42 = vmul.f32 %v748_v11, %v744_v39  ;;  %v767_v55 = vpop.permute.xlu1 %766 }
 0xd1b   :  { %v769_v43 = vmul.f32 %v767_v55, %v763_v41 }
 0xd1c   :  { %752 = vrot.lane.b32.xlu0 %v750_v42, %s1581_s27 }
 0xd1d   :  { %771 = vrot.lane.b32.xlu1 %v769_v43, %s1581_s27 }
 0xd8e   :  { %v753_v45 = vpop.permute.xlu0 %752 }
 0xd8f   :  { %v755_v47 = vadd.f32 %v753_v45, %v745_v44  ;;  %v772_v48 = vpop.permute.xlu1 %771 }
 0xd90   :  { %v774_v50 = vadd.f32 %v772_v48, %v764_v46 }
 0xd91   :  { %1467 = vtanh.f32 %v755_v47 }
 0xd92   :  { %1469 = vtanh.f32 %v774_v50 }
 0xd9b   :  { %v1468_v52 = vpop.eup %1467 }
 0xd9c   :  { %v1470_v54 = vpop.eup %1469  ;;  %758 = vrot.lane.b32.xlu0 %v1468_v52, %s1580_s3 }
 0xd9d   :  { %777 = vrot.lane.b32.xlu1 %v1470_v54, %s1580_s3 }
 0xe0e   :  { %v759_v56 = vpop.permute.xlu0 %758 }
 0xe0f   :  { %v761_v58 = vmul.f32 %v759_v56, %v744_v39  ;;  %v778_v60 = vpop.permute.xlu1 %777 }
 0xe10   :  { %v780_v61 = vmul.f32 %v778_v60, %v763_v41 }
 0xe11   :  { %782 = vrot.lane.b32.xlu0 %v761_v58, %s1581_s27 }
 0xe12   :  { %786 = vrot.lane.b32.xlu1 %v780_v61, %s1580_s3 }
 0xe83   :  { %v783_v62 = vpop.permute.xlu0 %782 }
 0xe84   :  { %v787_v63 = vpop.permute.xlu1 %786 }
 0xe85   :  { %v789_v1 = vsel %vm404_vm10, %v783_v62, %v787_v63 }
 0xe86   :  { %v790_v2 = vpack.c.bf16 %v789_v1, %v789_v1 }
 0xe88   :  { %1295 = vmatmul.mubr.msk.bf16.vlgmr.msra.gmra.mrb[8].mxu0 %vm336_vm11, %v790_v2 }
 0xe89   :  { %989 = vmatpush1.bf16.msra.mxu0 %v1673_v12  ;;  %1020 = vmatprep.mubr.bf16.mxu0 %v1577_v0 }
 0xe8a   :  { %990 = vmatprep.subr.bf16.mxu0 %v1680_v13 }
 0xe8d   :  { %991 = vmatpush1.bf16.msra.mxu0 %v1691_v16 }
 0xe8e   :  { %992 = vmatprep.subr.bf16.mxu0 %v1699_v17 }
 0xe91   :  { %993 = vmatpush1.bf16.msra.mxu0 %v1704_v18 }
 0xe92   :  { %994 = vmatprep.subr.bf16.mxu0 %v1710_v19 }
 0xe95   :  { %995 = vmatpush1.bf16.msra.mxu0 %v1716_v20 }
 0xe96   :  { %1385 = vmatprep.subr.bf16.mxu0 %v1579_v40 }
 0xf5b   :  { %v830_v49 = vpop.f32.mrb[8].mxu0 }
 0xf5c   :  { %v831_v3 = vadd.f32 %v830_v49, %v1763_v53  ;;  %v832_v4 = vpop.f32.mrb[9].mxu0 }
 0xf5d   :  { %v833_v5 = vadd.f32 %v832_v4, %v1786_v27  ;;  %v834_v6 = vpop.f32.mrb[10].mxu0 }
 0xf5e   :  { %1471 = vtanh.f32 %v831_v3  ;;  %v835_v7 = vpop.f32.mrb[11].mxu0 }
 0xf5f   :  { %1473 = vtanh.f32 %v833_v5 }
 0xf68   :  { %v1472_v8 = vpop.eup %1471 }
 0xf69   :  { %v1474_v9 = vpop.eup %1473  ;;  %843 = vrot.lane.b32.xlu0 %v1472_v8, %s1580_s3  ;;  %v839_v10 = vadd.f32 1.0, %v1472_v8 }
 0xf6a   :  { %862 = vrot.lane.b32.xlu1 %v1474_v9, %s1580_s3  ;;  %v858_v14 = vadd.f32 1.0, %v1474_v9 }
 0xf6b   :  { %v840_v15 = vmul.f32 0.5, %v839_v10 }
 0xf6c   :  { %v859_v22 = vmul.f32 0.5, %v858_v14 }
 0xf6d   :  { %v841_v26 = vmul.f32 %v840_v15, %v755_v47 }
 0xf6e   :  { %v860_v28 = vmul.f32 %v859_v22, %v774_v50 }
 0xfdb   :  { %v844_v21 = vpop.permute.xlu0 %843 }
 0xfdc   :  { %v846_v23 = vmul.f32 %v844_v21, %v840_v15  ;;  %v863_v53 = vpop.permute.xlu1 %862 }
 0xfdd   :  { %v865_v24 = vmul.f32 %v863_v53, %v859_v22 }
 0xfde   :  { %848 = vrot.lane.b32.xlu0 %v846_v23, %s1581_s27 }
 0xfdf   :  { %867 = vrot.lane.b32.xlu1 %v865_v24, %s1581_s27 }
0x1050   :  { %v849_v51 = vpop.permute.xlu0 %848 }
0x1051   :  { %v851_v29 = vadd.f32 %v849_v51, %v841_v26  ;;  %v868_v30 = vpop.permute.xlu1 %867 }
0x1052   :  { %v870_v31 = vadd.f32 %v868_v30, %v860_v28 }
0x1053   :  { %1475 = vtanh.f32 %v851_v29 }
0x1054   :  { %1477 = vtanh.f32 %v870_v31 }
0x105d   :  { %v1476_v32 = vpop.eup %1475 }
0x105e   :  { %v1478_v33 = vpop.eup %1477  ;;  %854 = vrot.lane.b32.xlu0 %v1476_v32, %s1580_s3 }
0x105f   :  { %873 = vrot.lane.b32.xlu1 %v1478_v33, %s1580_s3 }
0x10d0   :  { %v855_v34 = vpop.permute.xlu0 %854 }
0x10d1   :  { %v857_v35 = vmul.f32 %v855_v34, %v840_v15  ;;  %v874_v36 = vpop.permute.xlu1 %873 }
0x10d2   :  { %v876_v37 = vmul.f32 %v874_v36, %v859_v22 }
0x10d3   :  { %878 = vrot.lane.b32.xlu0 %v857_v35, %s1581_s27 }
0x10d4   :  { %882 = vrot.lane.b32.xlu1 %v876_v37, %s1580_s3 }
0x1145   :  { %v879_v38 = vpop.permute.xlu0 %878 }
0x1146   :  { %v883_v39 = vpop.permute.xlu1 %882 }
0x1147   :  { %v885_v11 = vsel %vm404_vm10, %v879_v38, %v883_v39 }
0x1148   :  { %v886_v41 = vpack.c.bf16 %v885_v11, %v885_v11 }
0x114a   :  { %1296 = vmatmul.mubr.msk.bf16.vlgmr.msra.gmra.mrb[20].mxu1 %vm336_vm11, %v886_v41 }
0x114b   :  { %1084 = vmatpush1.bf16.msra.mxu1 %v1673_v12  ;;  %1115 = vmatprep.mubr.bf16.mxu1 %v1577_v0 }
0x114c   :  { %1085 = vmatprep.subr.bf16.mxu1 %v1680_v13 }
0x114f   :  { %1086 = vmatpush1.bf16.msra.mxu1 %v1691_v16 }
0x1150   :  { %1087 = vmatprep.subr.bf16.mxu1 %v1699_v17 }
0x1153   :  { %1088 = vmatpush1.bf16.msra.mxu1 %v1704_v18 }
0x1154   :  { %1089 = vmatprep.subr.bf16.mxu1 %v1710_v19 }
0x1157   :  { %1090 = vmatpush1.bf16.msra.mxu1 %v1716_v20 }
0x121d   :  { %v926_v42 = vpop.f32.mrb[20].mxu1 }
0x121e   :  { %v927_v55 = vadd.f32 %v926_v42, %v1769_v59  ;;  %v928_v43 = vpop.f32.mrb[21].mxu1 }
0x121f   :  { %v929_v12 = vadd.f32 %v928_v43, %v1786_v27  ;;  %v930_v44 = vpop.f32.mrb[22].mxu1 }
0x1220   :  { %1479 = vtanh.f32 %v927_v55  ;;  %v931_v0 = vpop.f32.mrb[23].mxu1 }
0x1221   :  { %1481 = vtanh.f32 %v929_v12 }
0x122a   :  { %v1480_v13 = vpop.eup %1479 }
0x122b   :  { %v1482_v16 = vpop.eup %1481  ;;  %939 = vrot.lane.b32.xlu0 %v1480_v13, %s1580_s3  ;;  %v935_v17 = vadd.f32 1.0, %v1480_v13 }
0x122c   :  { %958 = vrot.lane.b32.xlu1 %v1482_v16, %s1580_s3  ;;  %v954_v18 = vadd.f32 1.0, %v1482_v16 }
0x122d   :  { %v936_v19 = vmul.f32 0.5, %v935_v17 }
0x122e   :  { %v955_v45 = vmul.f32 0.5, %v954_v18 }
0x122f   :  { %v937_v48 = vmul.f32 %v936_v19, %v851_v29 }
0x1230   :  { %v956_v52 = vmul.f32 %v955_v45, %v870_v31 }
0x129d   :  { %v940_v20 = vpop.permute.xlu0 %939 }
0x129e   :  { %v942_v46 = vmul.f32 %v940_v20, %v936_v19  ;;  %v959_v59 = vpop.permute.xlu1 %958 }
0x129f   :  { %v961_v47 = vmul.f32 %v959_v59, %v955_v45 }
0x12a0   :  { %944 = vrot.lane.b32.xlu0 %v942_v46, %s1581_s27 }
0x12a1   :  { %963 = vrot.lane.b32.xlu1 %v961_v47, %s1581_s27 }
0x1312   :  { %v945_v50 = vpop.permute.xlu0 %944 }
0x1313   :  { %v947_v54 = vadd.f32 %v945_v50, %v937_v48  ;;  %v964_v56 = vpop.permute.xlu1 %963  ;;  %v1156_v48 = vld [vmem:[#allocation6] sm:$0xff]  ;;  %v1157_v50 = vld [vmem:[#allocation6 + $0x8] sm:$0xff] }
0x1314   :  { %v966_v58 = vadd.f32 %v964_v56, %v956_v52  ;;  %v1158_v52 = vld [vmem:[#allocation6 + $0x10] sm:$0xff] }
0x1315   :  { %1483 = vtanh.f32 %v947_v54 }
0x1316   :  { %1485 = vtanh.f32 %v966_v58 }
0x131f   :  { %v1484_v60 = vpop.eup %1483 }
0x1320   :  { %v1486_v61 = vpop.eup %1485  ;;  %950 = vrot.lane.b32.xlu0 %v1484_v60, %s1580_s3  ;;  %v1161_v60 = vld [vmem:[#allocation6 + $0x28] sm:$0xff] }
0x1321   :  { %969 = vrot.lane.b32.xlu1 %v1486_v61, %s1580_s3 }
0x1392   :  { %v951_v62 = vpop.permute.xlu0 %950 }
0x1393   :  { %v953_v63 = vmul.f32 %v951_v62, %v936_v19  ;;  %v970_v1 = vpop.permute.xlu1 %969  ;;  %v1162_v62 = vld [vmem:[#allocation6 + $0x30] sm:$0xff] }
0x1394   :  { %v972_v2 = vmul.f32 %v970_v1, %v955_v45 }
0x1395   :  { %974 = vrot.lane.b32.xlu0 %v953_v63, %s1581_s27  ;;  %v1163_v63 = vld [vmem:[#allocation6 + $0x38] sm:$0xff] }
0x1396   :  { %978 = vrot.lane.b32.xlu1 %v972_v2, %s1580_s3  ;;  %v1395_v2 = vpack.c.bf16 %v1163_v63, %v1162_v62 }
0x1407   :  { %v975_v49 = vpop.permute.xlu0 %974 }
0x1408   :  { %v979_v3 = vpop.permute.xlu1 %978 }
0x1409   :  { %v981_v4 = vsel %vm404_vm10, %v975_v49, %v979_v3  ;;  %v1164_v49 = vld [vmem:[#allocation6 + $0x40] sm:$0xff]  ;;  %v1165_v3 = vld [vmem:[#allocation6 + $0x48] sm:$0xff] }
0x140a   :  { %v982_v5 = vpack.c.bf16 %v981_v4, %v981_v4  ;;  %v1398_v4 = vpack.c.bf16 %v1165_v3, %v1164_v49 }
0x140c   :  { %1297 = vmatmul.mubr.msk.bf16.vlgmr.msra.gmra.mrb[12].mxu0 %vm336_vm11, %v982_v5  ;;  %v1166_v5 = vld [vmem:[#allocation6 + $0x50] sm:$0xff] }
0x140d   :  { %1378 = vmatprep.mubr.msk.f32.mxu0 %vm1582_vm12, %v1578_v25 }
0x14df   :  { %v1022_v6 = vpop.f32.mrb[12].mxu0 }
0x14e0   :  { %v1023_v7 = vadd.f32 %v1022_v6, %v1767_v57  ;;  %v1024_v8 = vpop.f32.mrb[13].mxu0  ;;  %v1167_v6 = vld [vmem:[#allocation6 + $0x58] sm:$0xff] }
0x14e1   :  { %v1025_v9 = vadd.f32 %v1024_v8, %v1786_v27  ;;  %v1026_v10 = vpop.f32.mrb[14].mxu0  ;;  %v1168_v8 = vld [vmem:[#allocation6 + $0x60] sm:$0xff] }
0x14e2   :  { %1487 = vtanh.f32 %v1023_v7  ;;  %v1027_v14 = vpop.f32.mrb[15].mxu0  ;;  %v1401_v7 = vpack.c.bf16 %v1167_v6, %v1166_v5 }
0x14e3   :  { %1489 = vtanh.f32 %v1025_v9  ;;  %v1169_v9 = vld [vmem:[#allocation6 + $0x68] sm:$0xff]  ;;  %v1170_v14 = vld [vmem:[#allocation6 + $0x70] sm:$0xff] }
0x14e4   :  { %v1404_v10 = vpack.c.bf16 %v1169_v9, %v1168_v8 }
0x14ec   :  { %v1488_v15 = vpop.eup %1487 }
0x14ed   :  { %v1490_v21 = vpop.eup %1489  ;;  %1035 = vrot.lane.b32.xlu0 %v1488_v15, %s1580_s3  ;;  %v1031_v22 = vadd.f32 1.0, %v1488_v15  ;;  %v1171_v15 = vld [vmem:[#allocation6 + $0x78] sm:$0xff] }
0x14ee   :  { %1054 = vrot.lane.b32.xlu1 %v1490_v21, %s1580_s3  ;;  %v1050_v23 = vadd.f32 1.0, %v1490_v21  ;;  %v1407_v21 = vpack.c.bf16 %v1171_v15, %v1170_v14 }
0x14ef   :  { %v1032_v53 = vmul.f32 0.5, %v1031_v22 }
0x14f0   :  { %v1051_v26 = vmul.f32 0.5, %v1050_v23 }
0x14f1   :  { %v1033_v29 = vmul.f32 %v1032_v53, %v947_v54  ;;  %v1159_v54 = vld [vmem:[#allocation6 + $0x18] sm:$0xff] }
0x14f2   :  { %v1052_v31 = vmul.f32 %v1051_v26, %v966_v58  ;;  %v1389_v56 = vpack.c.bf16 %v1159_v54, %v1158_v52  ;;  %v1160_v58 = vld [vmem:[#allocation6 + $0x20] sm:$0xff] }
0x14f3   :  { %v1392_v61 = vpack.c.bf16 %v1161_v60, %v1160_v58 }
0x155f   :  { %v1036_v24 = vpop.permute.xlu0 %1035 }
0x1560   :  { %v1038_v51 = vmul.f32 %v1036_v24, %v1032_v53  ;;  %v1055_v57 = vpop.permute.xlu1 %1054 }
0x1561   :  { %v1057_v28 = vmul.f32 %v1055_v57, %v1051_v26 }
0x1562   :  { %1040 = vrot.lane.b32.xlu0 %v1038_v51, %s1581_s27 }
0x1563   :  { %1059 = vrot.lane.b32.xlu1 %v1057_v28, %s1581_s27 }
0x15d4   :  { %v1041_v30 = vpop.permute.xlu0 %1040 }
0x15d5   :  { %v1909_v32 = vadd.f32 %v1041_v30, %v1033_v29  ;;  %v1060_v33 = vpop.permute.xlu1 %1059 }
0x15d6   :  { %v1062_v34 = vadd.f32 %v1060_v33, %v1052_v31 }
0x15d7   :  { %1491 = vtanh.f32 %v1909_v32 }
0x15d8   :  { %1493 = vtanh.f32 %v1062_v34 }
0x15e1   :  { %v1492_v35 = vpop.eup %1491 }
0x15e2   :  { %v1494_v36 = vpop.eup %1493  ;;  %1046 = vrot.lane.b32.xlu0 %v1492_v35, %s1580_s3 }
0x15e3   :  { %1065 = vrot.lane.b32.xlu1 %v1494_v36, %s1580_s3 }
0x1654   :  { %v1047_v37 = vpop.permute.xlu0 %1046 }
0x1655   :  { %v1049_v38 = vmul.f32 %v1047_v37, %v1032_v53  ;;  %v1066_v39 = vpop.permute.xlu1 %1065 }
0x1656   :  { %v1068_v11 = vmul.f32 %v1066_v39, %v1051_v26 }
0x1657   :  { %1070 = vrot.lane.b32.xlu0 %v1049_v38, %s1581_s27 }
0x1658   :  { %1074 = vrot.lane.b32.xlu1 %v1068_v11, %s1580_s3 }
0x16c9   :  { %v1916_v41 = vpop.permute.xlu0 %1070 }
0x16ca   :  { %v1075_v42 = vpop.permute.xlu1 %1074  ;;  %v1151_v53 = vsel %vm404_vm10, %v1916_v41, %v1909_v32 }
0x16cb   :  { %v1077_v55 = vsel %vm404_vm10, %v1916_v41, %v1075_v42 }
0x16cc   :  { %v1078_v43 = vpack.c.bf16 %v1077_v55, %v1077_v55 }
0x16ce   :  { %1298 = vmatmul.mubr.msk.bf16.vlgmr.msra.gmra.mrb[24].mxu1 %vm336_vm11, %v1078_v43 }
0x17a1   :  { %v1117_v12 = vpop.f32.mrb[24].mxu1 }
0x17a2   :  { %v1118_v44 = vpop.f32.mrb[25].mxu1 }
0x17a3   :  { %v1119_v0 = vadd.f32 %v1118_v44, %v1786_v27  ;;  %v1120_v13 = vpop.f32.mrb[26].mxu1  ;;  %v1386_v27 = vpack.c.bf16 %v1157_v50, %v1156_v48 }
0x17a4   :  { %v1121_v16 = vpop.f32.mrb[27].mxu1 }
0x17a5   :  { %1495 = vtanh.f32 %v1119_v0  ;;  %1387 = vmatpush3.bf16.msra.mxu0 %v1386_v27 }
0x17a6   :  { %1388 = vmatprep.subr.bf16.mxu0 %v1579_v40 }
0x17a9   :  { %1390 = vmatpush3.bf16.msra.mxu0 %v1389_v56 }
0x17aa   :  { %1391 = vmatprep.subr.bf16.mxu0 %v1579_v40 }
0x17ad   :  { %1393 = vmatpush3.bf16.msra.mxu0 %v1392_v61 }
0x17ae   :  { %1394 = vmatprep.subr.bf16.mxu0 %v1579_v40 }
0x17af   :  { %v1496_v17 = vpop.eup %1495 }
0x17b0   :  { %1128 = vrot.lane.b32.xlu0 %v1496_v17, %s1580_s3  ;;  %v1124_v18 = vadd.f32 1.0, %v1496_v17 }
0x17b1   :  { %1396 = vmatpush3.bf16.msra.mxu0 %v1395_v2 }
0x17b2   :  { %v1125_v19 = vmul.f32 0.5, %v1124_v18  ;;  %1397 = vmatprep.subr.bf16.mxu0 %v1579_v40 }
0x17b4   :  { %v1126_v46 = vmul.f32 %v1125_v19, %v1062_v34 }
0x17b5   :  { %1399 = vmatpush3.bf16.msra.mxu0 %v1398_v4 }
0x17b6   :  { %1400 = vmatprep.subr.bf16.mxu0 %v1579_v40 }
0x17b9   :  { %1402 = vmatpush3.bf16.msra.mxu0 %v1401_v7 }
0x17ba   :  { %1403 = vmatprep.subr.bf16.mxu0 %v1579_v40 }
0x17bd   :  { %1405 = vmatpush3.bf16.msra.mxu0 %v1404_v10 }
0x17be   :  { %1406 = vmatprep.subr.bf16.mxu0 %v1579_v40  ;;  %v1299_v40 = vld [vmem:[%s1958_s5] ss:$0 sm:$0xff] }
0x17c1   :  { %1408 = vmatpush3.bf16.msra.mxu0 %v1407_v21 }
0x1822   :  { %v1129_v20 = vpop.permute.xlu0 %1128 }
0x1823   :  { %v1131_v45 = vmul.f32 %v1129_v20, %v1125_v19 }
0x1825   :  { %1133 = vrot.lane.b32.xlu1 %v1131_v45, %s1581_s27 }
0x1897   :  { %v1134_v59 = vpop.permute.xlu1 %1133 }
0x1898   :  { %v1136_v47 = vadd.f32 %v1134_v59, %v1126_v46 }
0x189a   :  { %1497 = vtanh.f32 %v1136_v47 }
0x18a4   :  { %v1498_v1 = vpop.eup %1497 }
0x18a5   :  { %1139 = vrot.lane.b32.xlu0 %v1498_v1, %s1580_s3 }
0x18a9   :  { %1148 = vrot.lane.b32.xlu0 %v1136_v47, %s1580_s3 }
0x1917   :  { %v1140_v22 = vpop.permute.xlu0 %1139 }
0x1918   :  { %v1142_v23 = vmul.f32 %v1140_v22, %v1125_v19 }
0x191a   :  { %1144 = vrot.lane.b32.xlu1 %v1142_v23, %s1583_s28 }
0x191b   :  { %v1149_v26 = vpop.permute.xlu0 %1148 }
0x198c   :  { %v1145_v24 = vpop.permute.xlu1 %1144 }
0x198d   :  { %v1152_v51 = vsel %vm336_vm11, %v1151_v53, %v1145_v24 }
0x198e   :  { %v1154_v57 = vsel %vm1153_vm13, %v1152_v51, %v1149_v26 }
0x198f   :  { %1499 = vtanh.f32 %v1154_v57 }
0x1999   :  { %v1500_v25 = vpop.eup %1499 }
0x199a   :  { %1379 = vmatmul.mubr.f32.vlgmr.msra.gmra.mrb[16].mxu0 %v1500_v25 }
0x1a6d   :  { %v1245_v28 = vpop.f32.mrb[16].mxu0 }
0x1a6e   :  { %v1246_v29 = vadd.f32 %v1299_v40, %v1245_v28  ;;  %v1380_v30 = vpop.f32.mrb[17].mxu0 }
0x1a70   :  { %1249 = vst [vmem:[#allocation8] sm:$0xff] %v1246_v29 }
0x1a71   :  { %1556 = shalt.err (!%p1553_p6)
}
0x1a72   :  { %s1557_s12 = scalar_lea.hbm %s1959_s6, 128 }
0x1a73   :  { %p1558_p7 = scmp.ne.s32.totalorder %s1959_s6, %s1557_s12  ;;  %p1561_p8 = scmp.lt.u32.totalorder %s1557_s12, %s1959_s6 }
0x1a75   :  { %p1563_p9 = pnand %p1561_p8, %p1558_p7 }
0x1a77   :  { %1566 = shalt.err (!%p1563_p9)
}
0x1a78   :  { %1259 = dma.vmem_to_hbm [thread:$0]  %s1257_s8, 128, %s1959_s6, [#allocation5]  }
0x1a79   :  { %1571 = dma.done.wait [#allocation5], 128  }
0x1a7a   :  { %1572 = vsyncadd [#allocation5], 4294967168 }
0x1a7b   :  { %1263 = vsyncpa [#allocation4], 1 }
0x1a7c   :  { %1264 = vsyncpa [#allocation7], 1 }
0x1a7d   :  { %1265 = vsyncpa [#allocation5], 1 }

</bundles_post_ra>
